<compile_context>
chip_gen: v7x
topology: tpu7x:2x2x1
jax: 0.10.0
libtpu: 0.0.40
codegen_flags: <defaults>
</compile_context>

<pallas_src>
import functools

import jax
import jax.numpy as jnp
from jax.experimental import pallas as pl
from jax.experimental.pallas import tpu as pltpu


# --------------------------------------------------------------------------------------
# Kernel 1: attention + single-step LSTM cell (small operands -> single VMEM block)
# --------------------------------------------------------------------------------------
def attn_lstm_kernel(compute_dtype,
                     emb_ref, h0_ref, c0_ref, enc_ref,
                     attn_w_ref, attn_b_ref, v_w_ref,
                     w_ih_ref, b_ih_ref, w_hh_ref, b_hh_ref,
                     h_out_ref, c_out_ref, attn_out_ref):
    B, S, H = enc_ref.shape
    E = emb_ref.shape[1]
    cdt = compute_dtype

    emb = emb_ref[...]                        # (B, E)    f32
    h0 = h0_ref[...]                          # (B, H)    f32
    c0 = c0_ref[...]                          # (B, H)    f32
    enc = enc_ref[...]                        # (B, S, H) bf16 (cast once outside the step)

    h0_c = h0.astype(cdt)
    enc_c = enc.astype(cdt)                   # no-op when enc is already bf16

    # ---- attention energy: tanh([h ; enc] @ attn_w + attn_b), concat-free (two MXU dots) ----
    w_hid = attn_w_ref[:H, :].astype(cdt)     # (H, H) applied to the repeated hidden
    w_enc = attn_w_ref[H:, :].astype(cdt)     # (H, H) applied to the encoder outputs
    part_h = jnp.dot(h0_c, w_hid, preferred_element_type=jnp.float32)            # (B, H)
    part_e = jnp.dot(enc_c.reshape(B * S, H), w_enc,
                     preferred_element_type=jnp.float32).reshape(B, S, H)         # (B, S, H)
    # TODO(synk): on v6e/v7x (bf16 EUP) this tanh could run packed bf16 for ~2x EUP
    # throughput; kept f32 so the same kernel is optimal-safe on v5e.
    energy = jnp.tanh(part_h[:, None, :] + part_e + attn_b_ref[...][None, :, :])  # f32

    # ---- scores = energy . v : VPU broadcast-multiply + XLU lane reduce (no M=1 matmuls) ----
    v_row = v_w_ref[...]                                                           # (1, H) f32
    scores = jnp.sum(energy * v_row[None, :, :], axis=-1)                          # (B, S) f32

    # ---- softmax over the source axis (f32); the divide goes to the EUP via reciprocal ----
    m = jnp.max(scores, axis=1, keepdims=True)
    e = jnp.exp(scores - m)
    denom_inv = pl.reciprocal(jnp.sum(e, axis=1, keepdims=True), approx=True)
    attn = e * denom_inv                                                           # (B, S)
    attn_out_ref[...] = attn

    # ---- context = attn @ enc : VPU broadcast-multiply + XLU sublane reduce over S ----
    context = jnp.sum(attn[:, :, None] * enc, axis=1)                              # (B, H) f32

    # ---- single-step LSTM (PyTorch gate order i, f, g, o); concat-free gate matmul ----
    gates = (jnp.dot(emb.astype(cdt), w_ih_ref[:E, :].astype(cdt),
                     preferred_element_type=jnp.float32)
             + jnp.dot(context.astype(cdt), w_ih_ref[E:, :].astype(cdt),
                       preferred_element_type=jnp.float32)
             + jnp.dot(h0_c, w_hh_ref[...].astype(cdt),
                       preferred_element_type=jnp.float32)
             + b_ih_ref[...] + b_hh_ref[...])                                      # (B, 4H) f32
    i_g = jax.nn.sigmoid(gates[:, 0 * H:1 * H])
    f_g = jax.nn.sigmoid(gates[:, 1 * H:2 * H])
    g_g = jnp.tanh(gates[:, 2 * H:3 * H])
    o_g = jax.nn.sigmoid(gates[:, 3 * H:4 * H])

    c_new = f_g * c0 + i_g * g_g
    h_new = o_g * jnp.tanh(c_new)
    c_out_ref[...] = c_new
    h_out_ref[...] = h_new


# --------------------------------------------------------------------------------------
# Kernel 2: fc = h_new @ fc_w + fc_b, streamed over 128-aligned vocab tiles
# --------------------------------------------------------------------------------------
def fc_kernel(compute_dtype, h_ref, w_ref, b_ref, out_ref):
    h = h_ref[...].astype(compute_dtype)       # (B, H) resident across all vocab tiles
    w = w_ref[...].astype(compute_dtype)       # no-op: fc_w is stored in the compute dtype
    # TODO(synk): for very large V, fp8 (v7x) / int8 (v5e,v6e) weight-only storage with
    # per-tile scales would halve fc_w HBM traffic again.
    out_ref[...] = jnp.dot(h, w, preferred_element_type=jnp.float32) + b_ref[...]


def _choose_fc_tile(V, max_tile=2048):
    """Largest 128-aligned tile <= max_tile dividing V, keeping >= 2 tiles when possible
    (so the 'parallel' vocab axis can shard across v7x's two TensorCores)."""
    if V % 128 != 0:
        return V                               # unaligned toy vocab: single full-width block
    tile = max(128, (min(max_tile, V) // 128) * 128)
    while V % tile:
        tile -= 128
    if V // tile < 2 and V % 256 == 0:
        tile = V // 2
    return tile


def prepare_params(params, compute_dtype=jnp.bfloat16):
    """One-time cast of the streamed fc weight to the compute dtype.

    Do this ONCE at load time (fc_w at rest in bf16), never inside the per-step forward:
    a per-step cast re-reads and re-writes H*V elements of HBM every decode step.
    """
    p = dict(params)
    p["fc_w"] = params["fc_w"].astype(compute_dtype)
    return p


def decoder_forward(x, hidden, cell, encoder_outputs, params,
                    compute_dtype=jnp.bfloat16, max_fc_tile=2048):
    """One decode step. hidden/cell follow the PyTorch (1, B, H) LSTM layout."""
    B = x.shape[0]
    S, H = encoder_outputs.shape[1], encoder_outputs.shape[2]
    V = params["fc_w"].shape[1]

    # glue: embedding row gather.
    # TODO(synk): in an autoregressive decode loop, fold this gather into the kernel via
    # PrefetchScalarGridSpec + pl.Element, alias h/c in place with input_output_aliases,
    # and (optionally) fuse kernel 1 as a prologue of the fc grid to drop one launch.
    emb = jnp.take(params["embedding"], x[:, 0], axis=0)          # (B, E)
    h0 = hidden[0]                                                # (B, H)
    c0 = cell[0]                                                  # (B, H)

    # Stream encoder outputs in the compute dtype (cast once outside the decode loop;
    # this branch is a trace-time no-op when the caller already passes bf16).
    enc = encoder_outputs
    if enc.dtype != compute_dtype:
        enc = enc.astype(compute_dtype)

    vmem = pl.BlockSpec(memory_space=pltpu.MemorySpace.VMEM)

    # ---- kernel 1: attention + LSTM cell ----
    h_new, c_new, attn = pl.pallas_call(
        functools.partial(attn_lstm_kernel, compute_dtype),
        out_shape=(jax.ShapeDtypeStruct((B, H), jnp.float32),
                   jax.ShapeDtypeStruct((B, H), jnp.float32),
                   jax.ShapeDtypeStruct((B, S), jnp.float32)),
        in_specs=[vmem] * 11,
        out_specs=(vmem, vmem, vmem),
    )(emb, h0, c0, enc,
      params["attn_w"], params["attn_b"], params["v_w"],
      params["w_ih"], params["b_ih"], params["w_hh"], params["b_hh"])

    # ---- kernel 2: fc, tiled + pipelined over the vocab axis ----
    tile_v = _choose_fc_tile(V, max_fc_tile)
    num_tiles = V // tile_v

    # fc_w should already be in the compute dtype (see prepare_params); this fallback cast
    # only exists so un-prepared params still run — avoid it in a real decode loop.
    fc_w = params["fc_w"]
    if fc_w.dtype != compute_dtype:
        fc_w = fc_w.astype(compute_dtype)

    wbytes = jnp.dtype(compute_dtype).itemsize
    # double-buffered weight/bias/output tiles + resident h, plus slack.
    need = 2 * (H * tile_v * wbytes + tile_v * 4 + B * tile_v * 4 + B * H * 4) + (2 << 20)
    vmem_limit = int(min(max(need, 16 << 20), 32 << 20))  # safe headroom under v7x's 64 MiB

    pred = pl.pallas_call(
        functools.partial(fc_kernel, compute_dtype),
        out_shape=jax.ShapeDtypeStruct((B, V), jnp.float32),
        grid=(num_tiles,),
        in_specs=[pl.BlockSpec((B, H), lambda j: (0, 0)),         # h_new resident
                  pl.BlockSpec((H, tile_v), lambda j: (0, j)),    # streamed weight tiles
                  pl.BlockSpec((1, tile_v), lambda j: (0, j))],   # streamed bias tiles
        out_specs=pl.BlockSpec((B, tile_v), lambda j: (0, j)),
        compiler_params=pltpu.CompilerParams(
            dimension_semantics=("parallel",),                    # shard vocab tiles across TCs
            vmem_limit_bytes=vmem_limit),
    )(h_new, fc_w, params["fc_b"])

    return pred, h_new[None], c_new[None], attn


def reference_forward(x, hidden, cell, encoder_outputs, params):
    """Pure-JAX f32 reference replicating the PyTorch semantics (for validation)."""
    emb = jnp.take(params["embedding"], x[:, 0], axis=0)
    h0, c0 = hidden[0], cell[0]
    enc = encoder_outputs
    B, S, H = enc.shape

    hid_rep = jnp.broadcast_to(h0[:, None, :], (B, S, H))
    cat = jnp.concatenate([hid_rep, enc], axis=2)
    energy = jnp.tanh(cat @ params["attn_w"] + params["attn_b"][0])
    scores = jnp.einsum("bsh,h->bs", energy, params["v_w"][0])
    attn = jax.nn.softmax(scores, axis=1)
    context = jnp.einsum("bs,bsh->bh", attn, enc)

    lstm_in = jnp.concatenate([emb, context], axis=1)
    gates = (lstm_in @ params["w_ih"] + params["b_ih"][0]
             + h0 @ params["w_hh"] + params["b_hh"][0])
    i_g = jax.nn.sigmoid(gates[:, 0 * H:1 * H])
    f_g = jax.nn.sigmoid(gates[:, 1 * H:2 * H])
    g_g = jnp.tanh(gates[:, 2 * H:3 * H])
    o_g = jax.nn.sigmoid(gates[:, 3 * H:4 * H])
    c_new = f_g * c0 + i_g * g_g
    h_new = o_g * jnp.tanh(c_new)
    pred = h_new @ params["fc_w"] + params["fc_b"][0]
    return pred, h_new[None], c_new[None], attn


def init_params(key, vocab_size, embed_size, hidden_size):
    ks = jax.random.split(key, 10)
    s = 0.1
    return {
        "embedding": s * jax.random.normal(ks[0], (vocab_size, embed_size), jnp.float32),
        "attn_w":    s * jax.random.normal(ks[1], (2 * hidden_size, hidden_size), jnp.float32),
        "attn_b":    s * jax.random.normal(ks[2], (1, hidden_size), jnp.float32),
        "v_w":       s * jax.random.normal(ks[3], (1, hidden_size), jnp.float32),
        "w_ih":      s * jax.random.normal(ks[4], (embed_size + hidden_size, 4 * hidden_size), jnp.float32),
        "b_ih":      s * jax.random.normal(ks[5], (1, 4 * hidden_size), jnp.float32),
        "w_hh":      s * jax.random.normal(ks[6], (hidden_size, 4 * hidden_size), jnp.float32),
        "b_hh":      s * jax.random.normal(ks[7], (1, 4 * hidden_size), jnp.float32),
        "fc_w":      s * jax.random.normal(ks[8], (hidden_size, vocab_size), jnp.float32),
        "fc_b":      s * jax.random.normal(ks[9], (1, vocab_size), jnp.float32),
    }


if __name__ == "__main__":
    # Small but tiling-friendly shapes: H lane-dense (multiple of 128), B a multiple of 8,
    # V a multiple of 128 so the fc grid streams multiple weight tiles (>= 2 for megacore).
    vocab_size, embed_size, hidden_size = 2048, 32, 128
    batch, src_len = 8, 16

    key = jax.random.PRNGKey(0)
    k_p, k_x, k_h, k_c, k_e = jax.random.split(key, 5)

    params = init_params(k_p, vocab_size, embed_size, hidden_size)
    x = jax.random.randint(k_x, (batch, 1), 0, vocab_size, dtype=jnp.int32)
    hidden = jax.random.normal(k_h, (1, batch, hidden_size), jnp.float32)
    cell = jax.random.normal(k_c, (1, batch, hidden_size), jnp.float32)
    encoder_outputs = jax.random.normal(k_e, (batch, src_len, hidden_size), jnp.float32)

    # One-time casts (outside the per-step forward): fc_w at rest in bf16, encoder
    # outputs streamed to the decoder in bf16.
    run_params = prepare_params(params, jnp.bfloat16)
    encoder_outputs_c = encoder_outputs.astype(jnp.bfloat16)

    fwd = jax.jit(decoder_forward)
    pred, h_new, c_new, attn = fwd(x, hidden, cell, encoder_outputs_c, run_params)
    jax.block_until_ready((pred, h_new, c_new, attn))

    # Validate against the pure-JAX f32 reference (kernel feeds bf16 into the MXU -> loose tol).
    pred_r, h_r, c_r, attn_r = reference_forward(x, hidden, cell, encoder_outputs, params)
    tol = dict(atol=3e-2, rtol=3e-2)
    assert jnp.allclose(pred, pred_r, **tol), f"pred mismatch {jnp.max(jnp.abs(pred - pred_r))}"
    assert jnp.allclose(h_new, h_r, **tol), f"hidden mismatch {jnp.max(jnp.abs(h_new - h_r))}"
    assert jnp.allclose(c_new, c_r, **tol), f"cell mismatch {jnp.max(jnp.abs(c_new - c_r))}"
    assert jnp.allclose(attn, attn_r, **tol), f"attn mismatch {jnp.max(jnp.abs(attn - attn_r))}"

    assert pred.shape == (batch, vocab_size)
    assert h_new.shape == (1, batch, hidden_size)
    assert c_new.shape == (1, batch, hidden_size)
    assert attn.shape == (batch, src_len)

    print("KERNEL_OK")
</pallas_src>

<mosaic_0001>
module attributes {stable_mosaic.version = 11 : i64} {
  func.func @fc_kernel(%arg0: i32, %arg1: memref<8x128xf32, #tpu.memory_space<vmem>>, %arg2: memref<128x1024xbf16, #tpu.memory_space<vmem>>, %arg3: memref<1x1024xf32, #tpu.memory_space<vmem>>, %arg4: memref<8x1024xf32, #tpu.memory_space<vmem>>) attributes {dimension_semantics = [#tpu.dimension_semantics<parallel>], iteration_bounds = array<i64: 2>, scalar_prefetch = 0 : i64, scratch_operands = 0 : i64, tpu.core_type = #tpu.core_type<tc>, window_params = [{pipeline_mode = #tpu.pipeline_mode<synchronous>, transform_indices = @transform_0, window_bounds = array<i64: 8, 128>}, {transform_indices = @transform_1, window_bounds = array<i64: 128, 1024>}, {transform_indices = @transform_2, window_bounds = array<i64: 1, 1024>}, {transform_indices = @transform_3, window_bounds = array<i64: 8, 1024>}]} {
    %c0 = arith.constant 0 : index
    %c0_0 = arith.constant 0 : index
    %0 = vector.load %arg1[%c0, %c0_0] : memref<8x128xf32, #tpu.memory_space<vmem>>, vector<8x128xf32>
    %1 = arith.truncf %0 : vector<8x128xf32> to vector<8x128xbf16>
    %c0_1 = arith.constant 0 : index
    %c0_2 = arith.constant 0 : index
    %2 = vector.load %arg2[%c0_1, %c0_2] : memref<128x1024xbf16, #tpu.memory_space<vmem>>, vector<128x1024xbf16>
    %cst = arith.constant dense<0.000000e+00> : vector<8x1024xf32>
    %3 = tpu.matmul %1, %2, %cst {dimension_numbers = #tpu.dot_dimension_numbers<[1], [0], [0], [1], [0, 0, 1, 1], [], []>} : vector<8x128xbf16>, vector<128x1024xbf16>, vector<8x1024xf32> -> vector<8x1024xf32>
    %c0_3 = arith.constant 0 : index
    %c0_4 = arith.constant 0 : index
    %4 = vector.load %arg3[%c0_3, %c0_4] : memref<1x1024xf32, #tpu.memory_space<vmem>>, vector<1x1024xf32>
    %5 = vector.broadcast %4 : vector<1x1024xf32> to vector<8x1024xf32>
    %6 = arith.addf %3, %5 : vector<8x1024xf32>
    %c0_5 = arith.constant 0 : index
    %c0_6 = arith.constant 0 : index
    %7 = vector.load %arg4[%c0_5, %c0_6] : memref<8x1024xf32, #tpu.memory_space<vmem>>, vector<8x1024xf32>
    tpu.vector_store %arg4[%c0_5, %c0_6], %6 {strides = array<i32>} : memref<8x1024xf32, #tpu.memory_space<vmem>>, vector<8x1024xf32>,
    return
  }
  func.func @transform_0(%arg0: i32) -> (i32, i32) {
    %c0_i32 = arith.constant 0 : i32
    %c0_i32_0 = arith.constant 0 : i32
    %c0_i32_1 = arith.constant 0 : i32
    return %c0_i32, %c0_i32_0 : i32, i32
  }
  func.func @transform_1(%arg0: i32) -> (i32, i32) {
    %c0_i32 = arith.constant 0 : i32
    %c0_i32_0 = arith.constant 0 : i32
    return %c0_i32, %arg0 : i32, i32
  }
  func.func @transform_2(%arg0: i32) -> (i32, i32) {
    %c0_i32 = arith.constant 0 : i32
    %c0_i32_0 = arith.constant 0 : i32
    return %c0_i32, %arg0 : i32, i32
  }
  func.func @transform_3(%arg0: i32) -> (i32, i32) {
    %c0_i32 = arith.constant 0 : i32
    %c0_i32_0 = arith.constant 0 : i32
    return %c0_i32, %arg0 : i32, i32
  }
}

module attributes {stable_mosaic.version = 11 : i64} {
  func.func @attn_lstm_kernel(%arg0: memref<8x32xf32, #tpu.memory_space<vmem>>, %arg1: memref<8x128xf32, #tpu.memory_space<vmem>>, %arg2: memref<8x128xf32, #tpu.memory_space<vmem>>, %arg3: memref<8x16x128xbf16, #tpu.memory_space<vmem>>, %arg4: memref<256x128xf32, #tpu.memory_space<vmem>>, %arg5: memref<1x128xf32, #tpu.memory_space<vmem>>, %arg6: memref<1x128xf32, #tpu.memory_space<vmem>>, %arg7: memref<160x512xf32, #tpu.memory_space<vmem>>, %arg8: memref<1x512xf32, #tpu.memory_space<vmem>>, %arg9: memref<128x512xf32, #tpu.memory_space<vmem>>, %arg10: memref<1x512xf32, #tpu.memory_space<vmem>>, %arg11: memref<8x128xf32, #tpu.memory_space<vmem>>, %arg12: memref<8x128xf32, #tpu.memory_space<vmem>>, %arg13: memref<8x16xf32, #tpu.memory_space<vmem>>) attributes {dimension_semantics = [], scalar_prefetch = 0 : i64, scratch_operands = 0 : i64, tpu.core_type = #tpu.core_type<tc>} {
    %c0 = arith.constant 0 : index
    %c0_0 = arith.constant 0 : index
    %0 = vector.load %arg0[%c0, %c0_0] : memref<8x32xf32, #tpu.memory_space<vmem>>, vector<8x32xf32>
    %c0_1 = arith.constant 0 : index
    %c0_2 = arith.constant 0 : index
    %1 = vector.load %arg1[%c0_1, %c0_2] : memref<8x128xf32, #tpu.memory_space<vmem>>, vector<8x128xf32>
    %c0_3 = arith.constant 0 : index
    %c0_4 = arith.constant 0 : index
    %2 = vector.load %arg2[%c0_3, %c0_4] : memref<8x128xf32, #tpu.memory_space<vmem>>, vector<8x128xf32>
    %c0_5 = arith.constant 0 : index
    %c0_6 = arith.constant 0 : index
    %c0_7 = arith.constant 0 : index
    %3 = vector.load %arg3[%c0_5, %c0_6, %c0_7] : memref<8x16x128xbf16, #tpu.memory_space<vmem>>, vector<8x16x128xbf16>
    %4 = arith.truncf %1 : vector<8x128xf32> to vector<8x128xbf16>
    %c0_8 = arith.constant 0 : index
    %c0_9 = arith.constant 0 : index
    %5 = vector.load %arg4[%c0_8, %c0_9] : memref<256x128xf32, #tpu.memory_space<vmem>>, vector<128x128xf32>
    %6 = arith.truncf %5 : vector<128x128xf32> to vector<128x128xbf16>
    %c128 = arith.constant 128 : index
    %c0_10 = arith.constant 0 : index
    %7 = vector.load %arg4[%c128, %c0_10] : memref<256x128xf32, #tpu.memory_space<vmem>>, vector<128x128xf32>
    %8 = arith.truncf %7 : vector<128x128xf32> to vector<128x128xbf16>
    %cst = arith.constant dense<0.000000e+00> : vector<8x128xf32>
    %9 = tpu.matmul %4, %6, %cst {dimension_numbers = #tpu.dot_dimension_numbers<[1], [0], [0], [1], [0, 0, 1, 1], [], []>} : vector<8x128xbf16>, vector<128x128xbf16>, vector<8x128xf32> -> vector<8x128xf32>
    %10 = vector.shape_cast %3 : vector<8x16x128xbf16> to vector<128x128xbf16>
    %cst_11 = arith.constant dense<0.000000e+00> : vector<128x128xf32>
    %11 = tpu.matmul %10, %8, %cst_11 {dimension_numbers = #tpu.dot_dimension_numbers<[1], [0], [0], [1], [0, 0, 1, 1], [], []>} : vector<128x128xbf16>, vector<128x128xbf16>, vector<128x128xf32> -> vector<128x128xf32>
    %12 = vector.shape_cast %11 : vector<128x128xf32> to vector<8x16x128xf32>
    %13 = vector.shape_cast %9 : vector<8x128xf32> to vector<8x1x128xf32>
    %14 = vector.broadcast %13 : vector<8x1x128xf32> to vector<8x16x128xf32>
    %15 = arith.addf %14, %12 : vector<8x16x128xf32>
    %c0_12 = arith.constant 0 : index
    %c0_13 = arith.constant 0 : index
    %16 = vector.load %arg5[%c0_12, %c0_13] : memref<1x128xf32, #tpu.memory_space<vmem>>, vector<1x128xf32>
    %17 = vector.shape_cast %16 : vector<1x128xf32> to vector<1x1x128xf32>
    %18 = vector.broadcast %17 : vector<1x1x128xf32> to vector<8x16x128xf32>
    %19 = arith.addf %15, %18 : vector<8x16x128xf32>
    %20 = math.tanh %19 : vector<8x16x128xf32>
    %c0_14 = arith.constant 0 : index
    %c0_15 = arith.constant 0 : index
    %21 = vector.load %arg6[%c0_14, %c0_15] : memref<1x128xf32, #tpu.memory_space<vmem>>, vector<1x128xf32>
    %22 = vector.shape_cast %21 : vector<1x128xf32> to vector<1x1x128xf32>
    %23 = vector.broadcast %22 : vector<1x1x128xf32> to vector<8x16x128xf32>
    %24 = arith.mulf %20, %23 : vector<8x16x128xf32>
    %cst_16 = arith.constant dense<0.000000e+00> : vector<8x16xf32>
    %25 = vector.multi_reduction <add>, %24, %cst_16 [2] : vector<8x16x128xf32> to vector<8x16xf32>
    %cst_17 = arith.constant dense<0xFF800000> : vector<8xf32>
    %26 = vector.multi_reduction <maximumf>, %25, %cst_17 [1] : vector<8x16xf32> to vector<8xf32>
    %27 = vector.shape_cast %26 : vector<8xf32> to vector<8x1xf32>
    %28 = vector.broadcast %27 : vector<8x1xf32> to vector<8x16xf32>
    %29 = arith.subf %25, %28 : vector<8x16xf32>
    %30 = math.exp %29 : vector<8x16xf32>
    %cst_18 = arith.constant dense<0.000000e+00> : vector<8xf32>
    %31 = vector.multi_reduction <add>, %30, %cst_18 [1] : vector<8x16xf32> to vector<8xf32>
    %32 = vector.shape_cast %31 : vector<8xf32> to vector<8x1xf32>
    %33 = tpu.reciprocal %32 {approx = true} : vector<8x1xf32> -> vector<8x1xf32>
    %34 = vector.broadcast %33 : vector<8x1xf32> to vector<8x16xf32>
    %35 = arith.mulf %30, %34 : vector<8x16xf32>
    %c0_19 = arith.constant 0 : index
    %c0_20 = arith.constant 0 : index
    %36 = vector.load %arg13[%c0_19, %c0_20] : memref<8x16xf32, #tpu.memory_space<vmem>>, vector<8x16xf32>
    tpu.vector_store %arg13[%c0_19, %c0_20], %35 {strides = array<i32>} : memref<8x16xf32, #tpu.memory_space<vmem>>, vector<8x16xf32>,
    %37 = vector.shape_cast %35 : vector<8x16xf32> to vector<8x16x1xf32>
    %38 = arith.extf %3 : vector<8x16x128xbf16> to vector<8x16x128xf32>
    %39 = vector.broadcast %37 : vector<8x16x1xf32> to vector<8x16x128xf32>
    %40 = arith.mulf %39, %38 : vector<8x16x128xf32>
    %cst_21 = arith.constant dense<0.000000e+00> : vector<8x128xf32>
    %41 = vector.multi_reduction <add>, %40, %cst_21 [1] : vector<8x16x128xf32> to vector<8x128xf32>
    %42 = arith.truncf %0 : vector<8x32xf32> to vector<8x32xbf16>
    %c0_22 = arith.constant 0 : index
    %c0_23 = arith.constant 0 : index
    %43 = vector.load %arg7[%c0_22, %c0_23] : memref<160x512xf32, #tpu.memory_space<vmem>>, vector<32x512xf32>
    %44 = arith.truncf %43 : vector<32x512xf32> to vector<32x512xbf16>
    %cst_24 = arith.constant dense<0.000000e+00> : vector<8x512xf32>
    %45 = tpu.matmul %42, %44, %cst_24 {dimension_numbers = #tpu.dot_dimension_numbers<[1], [0], [0], [1], [0, 0, 1, 1], [], []>} : vector<8x32xbf16>, vector<32x512xbf16>, vector<8x512xf32> -> vector<8x512xf32>
    %46 = arith.truncf %41 : vector<8x128xf32> to vector<8x128xbf16>
    %c32 = arith.constant 32 : index
    %c0_25 = arith.constant 0 : index
    %47 = vector.load %arg7[%c32, %c0_25] : memref<160x512xf32, #tpu.memory_space<vmem>>, vector<128x512xf32>
    %48 = arith.truncf %47 : vector<128x512xf32> to vector<128x512xbf16>
    %cst_26 = arith.constant dense<0.000000e+00> : vector<8x512xf32>
    %49 = tpu.matmul %46, %48, %cst_26 {dimension_numbers = #tpu.dot_dimension_numbers<[1], [0], [0], [1], [0, 0, 1, 1], [], []>} : vector<8x128xbf16>, vector<128x512xbf16>, vector<8x512xf32> -> vector<8x512xf32>
    %50 = arith.addf %45, %49 : vector<8x512xf32>
    %c0_27 = arith.constant 0 : index
    %c0_28 = arith.constant 0 : index
    %51 = vector.load %arg9[%c0_27, %c0_28] : memref<128x512xf32, #tpu.memory_space<vmem>>, vector<128x512xf32>
    %52 = arith.truncf %51 : vector<128x512xf32> to vector<128x512xbf16>
    %cst_29 = arith.constant dense<0.000000e+00> : vector<8x512xf32>
    %53 = tpu.matmul %4, %52, %cst_29 {dimension_numbers = #tpu.dot_dimension_numbers<[1], [0], [0], [1], [0, 0, 1, 1], [], []>} : vector<8x128xbf16>, vector<128x512xbf16>, vector<8x512xf32> -> vector<8x512xf32>
    %54 = arith.addf %50, %53 : vector<8x512xf32>
    %c0_30 = arith.constant 0 : index
    %c0_31 = arith.constant 0 : index
    %55 = vector.load %arg8[%c0_30, %c0_31] : memref<1x512xf32, #tpu.memory_space<vmem>>, vector<1x512xf32>
    %56 = vector.broadcast %55 : vector<1x512xf32> to vector<8x512xf32>
    %57 = arith.addf %54, %56 : vector<8x512xf32>
    %c0_32 = arith.constant 0 : index
    %c0_33 = arith.constant 0 : index
    %58 = vector.load %arg10[%c0_32, %c0_33] : memref<1x512xf32, #tpu.memory_space<vmem>>, vector<1x512xf32>
    %59 = vector.broadcast %58 : vector<1x512xf32> to vector<8x512xf32>
    %60 = arith.addf %57, %59 : vector<8x512xf32>
    %61 = vector.extract_strided_slice %60 {offsets = [0, 0], sizes = [8, 128], strides = [1, 1]} : vector<8x512xf32> to vector<8x128xf32>
    %62 = arith.negf %61 : vector<8x128xf32>
    %63 = math.exp %62 : vector<8x128xf32>
    %cst_34 = arith.constant 1.000000e+00 : f32
    %64 = vector.broadcast %cst_34 : f32 to vector<8x128xf32>
    %65 = arith.addf %64, %63 : vector<8x128xf32>
    %66 = arith.divf %64, %65 : vector<8x128xf32>
    %67 = vector.extract_strided_slice %60 {offsets = [0, 128], sizes = [8, 128], strides = [1, 1]} : vector<8x512xf32> to vector<8x128xf32>
    %68 = arith.negf %67 : vector<8x128xf32>
    %69 = math.exp %68 : vector<8x128xf32>
    %cst_35 = arith.constant 1.000000e+00 : f32
    %70 = vector.broadcast %cst_35 : f32 to vector<8x128xf32>
    %71 = arith.addf %70, %69 : vector<8x128xf32>
    %72 = arith.divf %70, %71 : vector<8x128xf32>
    %73 = vector.extract_strided_slice %60 {offsets = [0, 256], sizes = [8, 128], strides = [1, 1]} : vector<8x512xf32> to vector<8x128xf32>
    %74 = math.tanh %73 : vector<8x128xf32>
    %75 = vector.extract_strided_slice %60 {offsets = [0, 384], sizes = [8, 128], strides = [1, 1]} : vector<8x512xf32> to vector<8x128xf32>
    %76 = arith.negf %75 : vector<8x128xf32>
    %77 = math.exp %76 : vector<8x128xf32>
    %cst_36 = arith.constant 1.000000e+00 : f32
    %78 = vector.broadcast %cst_36 : f32 to vector<8x128xf32>
    %79 = arith.addf %78, %77 : vector<8x128xf32>
    %80 = arith.divf %78, %79 : vector<8x128xf32>
    %81 = arith.mulf %72, %2 : vector<8x128xf32>
    %82 = arith.mulf %66, %74 : vector<8x128xf32>
    %83 = arith.addf %81, %82 : vector<8x128xf32>
    %84 = math.tanh %83 : vector<8x128xf32>
    %85 = arith.mulf %80, %84 : vector<8x128xf32>
    %c0_37 = arith.constant 0 : index
    %c0_38 = arith.constant 0 : index
    %86 = vector.load %arg12[%c0_37, %c0_38] : memref<8x128xf32, #tpu.memory_space<vmem>>, vector<8x128xf32>
    tpu.vector_store %arg12[%c0_37, %c0_38], %83 {strides = array<i32>} : memref<8x128xf32, #tpu.memory_space<vmem>>, vector<8x128xf32>,
    %c0_39 = arith.constant 0 : index
    %c0_40 = arith.constant 0 : index
    %87 = vector.load %arg11[%c0_39, %c0_40] : memref<8x128xf32, #tpu.memory_space<vmem>>, vector<8x128xf32>
    tpu.vector_store %arg11[%c0_39, %c0_40], %85 {strides = array<i32>} : memref<8x128xf32, #tpu.memory_space<vmem>>, vector<8x128xf32>,
    return
  }
}

</mosaic_0001>

<bundles_post_ra>
// kernel: decoder_forward.3
= control target key start
LH: loop header
LB: loop body
LE: loop exit
PB: predicated region body
PF: predicated region fallthrough
CT: control target
= control target key end

     0   :  { %8 = vsyncpa [#allocation4], 0  ;;  %s1569_s0 = inlined_call_operand.vmem [shape: f32[8,128], index: 0, kind: input, shape index: {}]   ;;  %s1570_s1 = inlined_call_operand.vmem [shape: bf16[128,2048], index: 1, kind: input, shape index: {}]   ;;  %s1571_s2 = inlined_call_operand.vmem [shape: f32[1,2048], index: 2, kind: input, shape index: {}]   ;;  %s1572_s3 = inlined_call_operand.hbm [shape: f32[8,2048], index: 3, kind: output, shape index: {}]  }
   0x1   :  { %10 = vsyncpa [#allocation4 + $0x1], 0  ;;  %s1233_s12 = smov 0   ;;  %s1235_s13 = smov 0  }
   0x2   :  { %s1237_s14 = smov 0   ;;  %s1239_s15 = smov 0  }
   0x3 LB: > { %s1254_s16 = sadd.s32 4294967295, %s1209_s15   ;;  %s1026_s17 = sadd.s32 4294967294, %s1209_s15   ;;  %s1209_s15 = sphi %s1239_s15, %s1578_s15   ;;  %s1205_s14 = sphi %s1237_s14, %s1577_s14   ;;  %s1201_s13 = sphi %s1235_s13, %s1576_s13   ;;  %s1197_s12 = sphi %s1233_s12, %s1575_s12  }
   0x4   : > { %s1258_s18 = sadd.s32 1, %s1209_s15   ;;  %s44_s19 = sadd.s32 1, %s1205_s14 }
   0x5   : > { %s41_s20 = ssub.s32 %s1209_s15, %s1258_s18  ;;  %p51_p0 = scmp.ne.s32.totalorder %s1205_s14, %s1201_s13 }
   0x6   : > { %p42_p1 = scmp.eq.s32.totalorder %s41_s20, 0  ;;  %p52_p2 = scmp.eq.s32.totalorder %s1209_s15, 0 }
   0x7   : > { %p107_p3 = scmp.eq.s32.totalorder %s1254_s16, 1  ;;  %p112_p4 = scmp.ne.s32.totalorder %s1201_s13, %s1197_s12 }
   0x8   : > { %s1270_s21 = scalar_select %p42_p1, %s1205_s14, %s44_s19  }
   0x9   : > { %p53_p5 = por %p52_p2, %p51_p0  ;;  %p1272_p6 = por %p107_p3, %p51_p0 }
   0xa   : > { %p113_p7 = scmp.eq.s32.totalorder %s1026_s17, 1  ;;  %p1028_p9 = scmp.ge.s32.totalorder %s1209_s15, 2 }
   0xc   : > { %p1276_p8 = por %p113_p7, %p112_p4  ;;  %132 = sbr.rel (%p1028_p9) target bundleno = 55 (0x37), region = 20 }
  0x13   : > { %135 = sbr.rel (!%p53_p5) target bundleno = 55 (0x37), region = 24  ;;  %s137_s24 = sand.u32 (%p53_p5), 1, %s1205_s14  }
  0x14   : > { %s1105_s25 = sshll.u32 (%p53_p5), %s1209_s15, 5  ;;  %s1029_s26 = sshll.u32 (%p53_p5), %s137_s24, 9 }
  0x15   : > { %s1288_s29 = scalar_lea.vmem (%p53_p5), %s1570_s1, %s1105_s25  ;;  %s1293_s30 = scalar_lea.vmem (%p53_p5), [#allocation2], %s1029_s26 }
  0x16   : > { %v155_v0 = vld [vmem:[%s1288_s29] sm:$0xff] (%p53_p5)  ;;  %v157_v1 = vld [vmem:[%s1288_s29 + $0x8] sm:$0xff] (%p53_p5)  ;;  %v159_v2 = vld [vmem:[%s1288_s29 + $0x10] sm:$0xff] (%p53_p5) }
  0x17   : > { %156 = vst [vmem:[%s1293_s30] sm:$0xff] (%p53_p5), %v155_v0  ;;  %158 = vst [vmem:[%s1293_s30 + $0x8] sm:$0xff] (%p53_p5), %v157_v1  ;;  %v161_v3 = vld [vmem:[%s1288_s29 + $0x18] sm:$0xff] (%p53_p5)  ;;  %v163_v4 = vld [vmem:[%s1288_s29 + $0x40] sm:$0xff] (%p53_p5) }
  0x18   : > { %160 = vst [vmem:[%s1293_s30 + $0x10] sm:$0xff] (%p53_p5), %v159_v2  ;;  %v165_v5 = vld [vmem:[%s1288_s29 + $0x48] sm:$0xff] (%p53_p5)  ;;  %162 = vst [vmem:[%s1293_s30 + $0x18] sm:$0xff] (%p53_p5), %v161_v3  ;;  %v167_v6 = vld [vmem:[%s1288_s29 + $0x50] sm:$0xff] (%p53_p5) }
  0x19   : > { %164 = vst [vmem:[%s1293_s30 + $0x20] sm:$0xff] (%p53_p5), %v163_v4  ;;  %166 = vst [vmem:[%s1293_s30 + $0x28] sm:$0xff] (%p53_p5), %v165_v5  ;;  %v169_v7 = vld [vmem:[%s1288_s29 + $0x58] sm:$0xff] (%p53_p5)  ;;  %v171_v8 = vld [vmem:[%s1288_s29 + $0x80] sm:$0xff] (%p53_p5) }
  0x1a   : > { %168 = vst [vmem:[%s1293_s30 + $0x30] sm:$0xff] %v167_v6  ;;  %170 = vst [vmem:[%s1293_s30 + $0x38] sm:$0xff] %v169_v7  ;;  %v173_v9 = vld [vmem:[%s1288_s29 + $0x88] sm:$0xff]  ;;  %v175_v10 = vld [vmem:[%s1288_s29 + $0x90] sm:$0xff] }
  0x1b   : > { %172 = vst [vmem:[%s1293_s30 + $0x40] sm:$0xff] %v171_v8  ;;  %v177_v11 = vld [vmem:[%s1288_s29 + $0x98] sm:$0xff]  ;;  %174 = vst [vmem:[%s1293_s30 + $0x48] sm:$0xff] %v173_v9  ;;  %v179_v12 = vld [vmem:[%s1288_s29 + $0xc0] sm:$0xff] }
  0x1c   : > { %176 = vst [vmem:[%s1293_s30 + $0x50] sm:$0xff] %v175_v10  ;;  %178 = vst [vmem:[%s1293_s30 + $0x58] sm:$0xff] %v177_v11  ;;  %v181_v13 = vld [vmem:[%s1288_s29 + $0xc8] sm:$0xff]  ;;  %v183_v14 = vld [vmem:[%s1288_s29 + $0xd0] sm:$0xff] }
  0x1d   : > { %180 = vst [vmem:[%s1293_s30 + $0x60] sm:$0xff] %v179_v12  ;;  %182 = vst [vmem:[%s1293_s30 + $0x68] sm:$0xff] %v181_v13  ;;  %v185_v15 = vld [vmem:[%s1288_s29 + $0xd8] sm:$0xff]  ;;  %v187_v16 = vld [vmem:[%s1288_s29 + $0x100] sm:$0xff] }
  0x1e   : > { %184 = vst [vmem:[%s1293_s30 + $0x70] sm:$0xff] %v183_v14  ;;  %v189_v17 = vld [vmem:[%s1288_s29 + $0x108] sm:$0xff]  ;;  %186 = vst [vmem:[%s1293_s30 + $0x78] sm:$0xff] %v185_v15  ;;  %v191_v18 = vld [vmem:[%s1288_s29 + $0x110] sm:$0xff] }
  0x1f   : > { %188 = vst [vmem:[%s1293_s30 + $0x80] sm:$0xff] %v187_v16  ;;  %190 = vst [vmem:[%s1293_s30 + $0x88] sm:$0xff] %v189_v17  ;;  %v193_v19 = vld [vmem:[%s1288_s29 + $0x118] sm:$0xff]  ;;  %v195_v20 = vld [vmem:[%s1288_s29 + $0x140] sm:$0xff] }
  0x20   : > { %192 = vst [vmem:[%s1293_s30 + $0x90] sm:$0xff] %v191_v18  ;;  %194 = vst [vmem:[%s1293_s30 + $0x98] sm:$0xff] %v193_v19  ;;  %v197_v21 = vld [vmem:[%s1288_s29 + $0x148] sm:$0xff]  ;;  %v199_v22 = vld [vmem:[%s1288_s29 + $0x150] sm:$0xff] }
  0x21   : > { %196 = vst [vmem:[%s1293_s30 + $0xa0] sm:$0xff] %v195_v20  ;;  %v201_v23 = vld [vmem:[%s1288_s29 + $0x158] sm:$0xff]  ;;  %198 = vst [vmem:[%s1293_s30 + $0xa8] sm:$0xff] %v197_v21  ;;  %v203_v24 = vld [vmem:[%s1288_s29 + $0x180] sm:$0xff] }
  0x22   : > { %200 = vst [vmem:[%s1293_s30 + $0xb0] sm:$0xff] %v199_v22  ;;  %202 = vst [vmem:[%s1293_s30 + $0xb8] sm:$0xff] %v201_v23  ;;  %v205_v25 = vld [vmem:[%s1288_s29 + $0x188] sm:$0xff]  ;;  %v207_v26 = vld [vmem:[%s1288_s29 + $0x190] sm:$0xff] }
  0x23   : > { %204 = vst [vmem:[%s1293_s30 + $0xc0] sm:$0xff] %v203_v24  ;;  %206 = vst [vmem:[%s1293_s30 + $0xc8] sm:$0xff] %v205_v25  ;;  %v209_v27 = vld [vmem:[%s1288_s29 + $0x198] sm:$0xff]  ;;  %v211_v28 = vld [vmem:[%s1288_s29 + $0x1c0] sm:$0xff] }
  0x24   : > { %208 = vst [vmem:[%s1293_s30 + $0xd0] sm:$0xff] %v207_v26  ;;  %v213_v29 = vld [vmem:[%s1288_s29 + $0x1c8] sm:$0xff]  ;;  %210 = vst [vmem:[%s1293_s30 + $0xd8] sm:$0xff] %v209_v27  ;;  %v215_v30 = vld [vmem:[%s1288_s29 + $0x1d0] sm:$0xff] }
  0x25   : > { %212 = vst [vmem:[%s1293_s30 + $0xe0] sm:$0xff] %v211_v28  ;;  %214 = vst [vmem:[%s1293_s30 + $0xe8] sm:$0xff] %v213_v29  ;;  %v217_v31 = vld [vmem:[%s1288_s29 + $0x1d8] sm:$0xff]  ;;  %v219_v32 = vld [vmem:[%s1288_s29 + $0x200] sm:$0xff] }
  0x26   : > { %216 = vst [vmem:[%s1293_s30 + $0xf0] sm:$0xff] %v215_v30  ;;  %218 = vst [vmem:[%s1293_s30 + $0xf8] sm:$0xff] %v217_v31  ;;  %v221_v33 = vld [vmem:[%s1288_s29 + $0x208] sm:$0xff]  ;;  %v223_v34 = vld [vmem:[%s1288_s29 + $0x210] sm:$0xff] }
  0x27   : > { %220 = vst [vmem:[%s1293_s30 + $0x100] sm:$0xff] %v219_v32  ;;  %v225_v35 = vld [vmem:[%s1288_s29 + $0x218] sm:$0xff]  ;;  %222 = vst [vmem:[%s1293_s30 + $0x108] sm:$0xff] %v221_v33  ;;  %v227_v36 = vld [vmem:[%s1288_s29 + $0x240] sm:$0xff] }
  0x28   : > { %224 = vst [vmem:[%s1293_s30 + $0x110] sm:$0xff] %v223_v34  ;;  %226 = vst [vmem:[%s1293_s30 + $0x118] sm:$0xff] %v225_v35  ;;  %v229_v37 = vld [vmem:[%s1288_s29 + $0x248] sm:$0xff]  ;;  %v231_v38 = vld [vmem:[%s1288_s29 + $0x250] sm:$0xff] }
  0x29   : > { %228 = vst [vmem:[%s1293_s30 + $0x120] sm:$0xff] %v227_v36  ;;  %230 = vst [vmem:[%s1293_s30 + $0x128] sm:$0xff] %v229_v37  ;;  %v233_v39 = vld [vmem:[%s1288_s29 + $0x258] sm:$0xff]  ;;  %v235_v40 = vld [vmem:[%s1288_s29 + $0x280] sm:$0xff] }
  0x2a   : > { %232 = vst [vmem:[%s1293_s30 + $0x130] sm:$0xff] %v231_v38  ;;  %v237_v41 = vld [vmem:[%s1288_s29 + $0x288] sm:$0xff]  ;;  %234 = vst [vmem:[%s1293_s30 + $0x138] sm:$0xff] %v233_v39  ;;  %v239_v42 = vld [vmem:[%s1288_s29 + $0x290] sm:$0xff] }
  0x2b   : > { %236 = vst [vmem:[%s1293_s30 + $0x140] sm:$0xff] %v235_v40  ;;  %238 = vst [vmem:[%s1293_s30 + $0x148] sm:$0xff] %v237_v41  ;;  %v241_v43 = vld [vmem:[%s1288_s29 + $0x298] sm:$0xff]  ;;  %v243_v44 = vld [vmem:[%s1288_s29 + $0x2c0] sm:$0xff] }
  0x2c   : > { %240 = vst [vmem:[%s1293_s30 + $0x150] sm:$0xff] %v239_v42  ;;  %242 = vst [vmem:[%s1293_s30 + $0x158] sm:$0xff] %v241_v43  ;;  %v245_v45 = vld [vmem:[%s1288_s29 + $0x2c8] sm:$0xff]  ;;  %v247_v46 = vld [vmem:[%s1288_s29 + $0x2d0] sm:$0xff] }
  0x2d   : > { %244 = vst [vmem:[%s1293_s30 + $0x160] sm:$0xff] %v243_v44  ;;  %v249_v47 = vld [vmem:[%s1288_s29 + $0x2d8] sm:$0xff]  ;;  %246 = vst [vmem:[%s1293_s30 + $0x168] sm:$0xff] %v245_v45  ;;  %v251_v48 = vld [vmem:[%s1288_s29 + $0x300] sm:$0xff] }
  0x2e   : > { %248 = vst [vmem:[%s1293_s30 + $0x170] sm:$0xff] %v247_v46  ;;  %250 = vst [vmem:[%s1293_s30 + $0x178] sm:$0xff] %v249_v47  ;;  %v253_v49 = vld [vmem:[%s1288_s29 + $0x308] sm:$0xff]  ;;  %v255_v50 = vld [vmem:[%s1288_s29 + $0x310] sm:$0xff] }
  0x2f   : > { %252 = vst [vmem:[%s1293_s30 + $0x180] sm:$0xff] %v251_v48  ;;  %254 = vst [vmem:[%s1293_s30 + $0x188] sm:$0xff] %v253_v49  ;;  %v257_v51 = vld [vmem:[%s1288_s29 + $0x318] sm:$0xff]  ;;  %v259_v52 = vld [vmem:[%s1288_s29 + $0x340] sm:$0xff] }
  0x30   : > { %256 = vst [vmem:[%s1293_s30 + $0x190] sm:$0xff] %v255_v50  ;;  %v261_v53 = vld [vmem:[%s1288_s29 + $0x348] sm:$0xff]  ;;  %258 = vst [vmem:[%s1293_s30 + $0x198] sm:$0xff] %v257_v51  ;;  %v263_v54 = vld [vmem:[%s1288_s29 + $0x350] sm:$0xff] }
  0x31   : > { %260 = vst [vmem:[%s1293_s30 + $0x1a0] sm:$0xff] %v259_v52  ;;  %262 = vst [vmem:[%s1293_s30 + $0x1a8] sm:$0xff] %v261_v53  ;;  %v265_v55 = vld [vmem:[%s1288_s29 + $0x358] sm:$0xff]  ;;  %v267_v56 = vld [vmem:[%s1288_s29 + $0x380] sm:$0xff] }
  0x32   : > { %264 = vst [vmem:[%s1293_s30 + $0x1b0] sm:$0xff] %v263_v54  ;;  %266 = vst [vmem:[%s1293_s30 + $0x1b8] sm:$0xff] %v265_v55  ;;  %v269_v57 = vld [vmem:[%s1288_s29 + $0x388] sm:$0xff]  ;;  %v271_v58 = vld [vmem:[%s1288_s29 + $0x390] sm:$0xff] }
  0x33   : > { %268 = vst [vmem:[%s1293_s30 + $0x1c0] sm:$0xff] %v267_v56  ;;  %v273_v59 = vld [vmem:[%s1288_s29 + $0x398] sm:$0xff]  ;;  %270 = vst [vmem:[%s1293_s30 + $0x1c8] sm:$0xff] %v269_v57  ;;  %v275_v60 = vld [vmem:[%s1288_s29 + $0x3c0] sm:$0xff] }
  0x34   : > { %272 = vst [vmem:[%s1293_s30 + $0x1d0] sm:$0xff] %v271_v58  ;;  %274 = vst [vmem:[%s1293_s30 + $0x1d8] sm:$0xff] %v273_v59  ;;  %v277_v61 = vld [vmem:[%s1288_s29 + $0x3c8] sm:$0xff]  ;;  %v279_v62 = vld [vmem:[%s1288_s29 + $0x3d0] sm:$0xff] }
  0x35   : > { %276 = vst [vmem:[%s1293_s30 + $0x1e0] sm:$0xff] %v275_v60  ;;  %278 = vst [vmem:[%s1293_s30 + $0x1e8] sm:$0xff] %v277_v61  ;;  %v281_v63 = vld [vmem:[%s1288_s29 + $0x3d8] sm:$0xff] }
  0x36   : > { %280 = vst [vmem:[%s1293_s30 + $0x1f0] sm:$0xff] %v279_v62  ;;  %282 = vst [vmem:[%s1293_s30 + $0x1f8] sm:$0xff] %v281_v63 }
  0x37 PF: > { %p1032_p10 = scmp.ge.s32.totalorder %s1209_s15, 1  ;;  %p295_p11 = scmp.lt.s32.totalorder %s1209_s15, 3 }
  0x39   : > { %p296_p12 = pnand %p1032_p10, %p295_p11 }
  0x3a   : > { %s1423_s4 = sand.u32 (!%p296_p12), 1, %s1201_s13   ;;  %v1211_v0 = vmov (!%p296_p12), 0   ;;  %s1035_s9 = sshll.u32 (!%p296_p12), %s1254_s16, 3 }
  0x3b   : > { %299 = sbr.rel (%p296_p12) target bundleno = 358 (0x166), region = 51  ;;  %s1033_s5 = sshll.u32 (!%p296_p12), %s1423_s4, 9  ;;  %797 = vmatprep.mubr.bf16.mxu0 (!%p296_p12), %v1211_v0  ;;  %838 = vmatprep.mubr.bf16.mxu1 (!%p296_p12), %v1211_v0 }
  0x3c   : > { %s1428_s6 = scalar_lea.vmem (!%p296_p12), [#allocation2], %s1033_s5  ;;  %p331_p13 = scmp.lt.s32.totalorder (!%p296_p12), %s1035_s9, 15 }
  0x3d   : > { %v339_v1 = vld [vmem:[%s1428_s6] sm:$0xff] (!%p296_p12)  ;;  %v340_v3 = vld [vmem:[%s1428_s6 + $0x8] sm:$0xff] (!%p296_p12)  ;;  %v341_v63 = vld [vmem:[%s1428_s6 + $0x10] sm:$0xff] (!%p296_p12)  ;;  %s1034_s19 = sshll.u32 (!%p296_p12), %s1423_s4, 6  ;;  %s1106_s24 = sshll.u32 (!%p296_p12), %s1254_s16, 10 }
  0x3e   : > { %v343_v2 = vld [vmem:[%s1428_s6 + $0x20] sm:$0xff] (!%p296_p12)  ;;  %v344_v5 = vld [vmem:[%s1428_s6 + $0x28] sm:$0xff] (!%p296_p12)  ;;  %s1510_s20 = scalar_lea.vmem (!%p296_p12), [#allocation3], %s1034_s19  ;;  %s1522_s16 = scalar_lea.hbm (!%p296_p12), %s1572_s3, %s1106_s24 }
  0x3f   : > { %v1037_v4 = vcombine.high (!%p296_p12), %v339_v1, %v343_v2  ;;  %v1036_v6 = vcombine.low (!%p296_p12), %v339_v1, %v343_v2  ;;  %v347_v7 = vld [vmem:[%s1428_s6 + $0x40] sm:$0xff] (!%p296_p12)  ;;  %v1039_v9 = vcombine.high (!%p296_p12), %v340_v3, %v344_v5  ;;  %v1038_v10 = vcombine.low (!%p296_p12), %v340_v3, %v344_v5  ;;  %v348_v12 = vld [vmem:[%s1428_s6 + $0x48] sm:$0xff] (!%p296_p12)  ;;  %v345_v1 = vld [vmem:[%s1428_s6 + $0x30] sm:$0xff] (!%p296_p12)  ;;  %s952_s25 = sshll.u32 (!%p296_p12), %s1510_s20, 4  ;;  %s938_s28 = scalar_lea.sflag (!%p296_p12), [#allocation4], %s1423_s4  ;;  %s1524_s25 = int_to_ptr.vmem [resolvable:$true] %s952_s25 }
  0x40   : > { %v351_v8 = vld [vmem:[%s1428_s6 + $0x60] sm:$0xff] (!%p296_p12)  ;;  %v352_v13 = vld [vmem:[%s1428_s6 + $0x68] sm:$0xff] (!%p296_p12)  ;;  %v342_v2 = vld [vmem:[%s1428_s6 + $0x18] sm:$0xff] (!%p296_p12)  ;;  %s1147_s29 = scalar_lea.vmem (!%p296_p12), %s1524_s25, 1024  ;;  %s1212_s30 = smov (!%p296_p12), [#allocation3]  }
  0x41   : > { %v1045_v11 = vcombine.high (!%p296_p12), %v347_v7, %v351_v8  ;;  %v355_v14 = vld [vmem:[%s1428_s6 + $0x80] sm:$0xff] (!%p296_p12)  ;;  %765 = vmatprep.subr.bf16.mxu0 (!%p296_p12), %v1037_v4  ;;  %v1047_v15 = vcombine.high (!%p296_p12), %v348_v12, %v352_v13  ;;  %v356_v17 = vld [vmem:[%s1428_s6 + $0x88] sm:$0xff] (!%p296_p12)  ;;  %806 = vmatprep.subr.bf16.mxu1 (!%p296_p12), %v1039_v9  ;;  %v1044_v19 = vcombine.low (!%p296_p12), %v347_v7, %v351_v8  ;;  %v346_v3 = vld [vmem:[%s1428_s6 + $0x38] sm:$0xff] (!%p296_p12)  ;;  %p1148_p0 = scmp.ne.s32.totalorder (!%p296_p12), %s1524_s25, %s1147_s29  ;;  %s1151_s5 = sshll.u32 (!%p296_p12), %s1212_s30, 4  ;;  %s1152_s5 = int_to_ptr.vmem [resolvable:$false] %s1151_s5 }
  0x42   : > { %v359_v16 = vld [vmem:[%s1428_s6 + $0xa0] sm:$0xff]  ;;  %v360_v18 = vld [vmem:[%s1428_s6 + $0xa8] sm:$0xff]  ;;  %766 = vmatpush1.bf16.msra.mxu0 %v1036_v6  ;;  %807 = vmatpush1.bf16.msra.mxu1 %v1038_v10  ;;  %v1046_v20 = vcombine.low %v348_v12, %v352_v13  ;;  %v1041_v7 = vcombine.high %v341_v63, %v345_v1  ;;  %v1043_v8 = vcombine.high %v342_v2, %v346_v3  ;;  %v349_v9 = vld [vmem:[%s1428_s6 + $0x50] sm:$0xff]  ;;  %s1580_s9 = smov (!%p331_p13, %s1035_s9), 15  ;;  %p1154_p3 = scmp.lt.s32.totalorder %s1524_s25, %s1152_s5 }
  0x43   : > { %767 = vmatprep.subr.bf16.mxu0 %v1045_v11  ;;  %v1053_v21 = vcombine.high %v355_v14, %v359_v16  ;;  %808 = vmatprep.subr.bf16.mxu1 %v1047_v15  ;;  %v1055_v22 = vcombine.high %v356_v17, %v360_v18  ;;  %v363_v23 = vld [vmem:[%s1428_s6 + $0xc0] sm:$0xff]  ;;  %v364_v25 = vld [vmem:[%s1428_s6 + $0xc8] sm:$0xff]  ;;  %v1052_v27 = vcombine.low %v355_v14, %v359_v16  ;;  %v353_v10 = vld [vmem:[%s1428_s6 + $0x70] sm:$0xff]  ;;  %s333_s17 = scalar_lea.vmem %s1571_s2, %s1580_s9  ;;  %p1149_p1 = pnand %p1148_p0, %p1272_p6 }
  0x44   : > { %v367_v24 = vld [vmem:[%s1428_s6 + $0xe0] sm:$0xff]  ;;  %v368_v26 = vld [vmem:[%s1428_s6 + $0xe8] sm:$0xff]  ;;  %v1054_v28 = vcombine.low %v356_v17, %v360_v18  ;;  %v350_v12 = vld [vmem:[%s1428_s6 + $0x58] sm:$0xff]  ;;  %v1040_v14 = vcombine.low %v341_v63, %v345_v1  ;;  %v1042_v15 = vcombine.low %v342_v2, %v346_v3  ;;  %v1049_v16 = vcombine.high %v349_v9, %v353_v10 }
  0x45   : > { %v1061_v29 = vcombine.high %v363_v23, %v367_v24  ;;  %v1063_v30 = vcombine.high %v364_v25, %v368_v26  ;;  %v371_v31 = vld [vmem:[%s1428_s6 + $0x100] sm:$0xff]  ;;  %v372_v33 = vld [vmem:[%s1428_s6 + $0x108] sm:$0xff]  ;;  %v1060_v35 = vcombine.low %v363_v23, %v367_v24  ;;  %v1062_v36 = vcombine.low %v364_v25, %v368_v26  ;;  %v354_v13 = vld [vmem:[%s1428_s6 + $0x78] sm:$0xff]  ;;  %p1150_p2 = pneg %p1149_p1 }
  0x46   : > { %768 = vmatpush1.bf16.msra.mxu0 %v1044_v19  ;;  %809 = vmatpush1.bf16.msra.mxu1 %v1046_v20  ;;  %v375_v32 = vld [vmem:[%s1428_s6 + $0x120] sm:$0xff]  ;;  %v376_v34 = vld [vmem:[%s1428_s6 + $0x128] sm:$0xff]  ;;  %v1051_v17 = vcombine.high %v350_v12, %v354_v13  ;;  %v357_v18 = vld [vmem:[%s1428_s6 + $0x90] sm:$0xff]  ;;  %v1050_v23 = vcombine.low %v350_v12, %v354_v13 }
  0x47   : > { %769 = vmatprep.subr.bf16.mxu0 %v1053_v21  ;;  %810 = vmatprep.subr.bf16.mxu1 %v1055_v22  ;;  %v1069_v37 = vcombine.high %v371_v31, %v375_v32  ;;  %v1071_v38 = vcombine.high %v372_v33, %v376_v34  ;;  %v379_v39 = vld [vmem:[%s1428_s6 + $0x140] sm:$0xff]  ;;  %v380_v41 = vld [vmem:[%s1428_s6 + $0x148] sm:$0xff]  ;;  %v1068_v43 = vcombine.low %v371_v31, %v375_v32  ;;  %v361_v19 = vld [vmem:[%s1428_s6 + $0xb0] sm:$0xff] }
  0x48   : > { %v383_v40 = vld [vmem:[%s1428_s6 + $0x160] sm:$0xff]  ;;  %v384_v42 = vld [vmem:[%s1428_s6 + $0x168] sm:$0xff]  ;;  %v1070_v44 = vcombine.low %v372_v33, %v376_v34  ;;  %v358_v20 = vld [vmem:[%s1428_s6 + $0x98] sm:$0xff]  ;;  %v1048_v22 = vcombine.low %v349_v9, %v353_v10  ;;  %v1057_v24 = vcombine.high %v357_v18, %v361_v19 }
  0x49   : > { %v1077_v45 = vcombine.high %v379_v39, %v383_v40  ;;  %v1079_v46 = vcombine.high %v380_v41, %v384_v42  ;;  %v387_v47 = vld [vmem:[%s1428_s6 + $0x180] sm:$0xff]  ;;  %v388_v49 = vld [vmem:[%s1428_s6 + $0x188] sm:$0xff]  ;;  %v1076_v51 = vcombine.low %v379_v39, %v383_v40  ;;  %v1078_v52 = vcombine.low %v380_v41, %v384_v42  ;;  %v362_v21 = vld [vmem:[%s1428_s6 + $0xb8] sm:$0xff] }
  0x4a   : > { %770 = vmatpush1.bf16.msra.mxu0 %v1052_v27  ;;  %811 = vmatpush1.bf16.msra.mxu1 %v1054_v28  ;;  %v391_v48 = vld [vmem:[%s1428_s6 + $0x1a0] sm:$0xff]  ;;  %v392_v50 = vld [vmem:[%s1428_s6 + $0x1a8] sm:$0xff]  ;;  %v1059_v25 = vcombine.high %v358_v20, %v362_v21  ;;  %v365_v26 = vld [vmem:[%s1428_s6 + $0xd0] sm:$0xff]  ;;  %v1058_v31 = vcombine.low %v358_v20, %v362_v21 }
  0x4b   : > { %771 = vmatprep.subr.bf16.mxu0 %v1061_v29  ;;  %812 = vmatprep.subr.bf16.mxu1 %v1063_v30  ;;  %v1085_v53 = vcombine.high %v387_v47, %v391_v48  ;;  %v1087_v54 = vcombine.high %v388_v49, %v392_v50  ;;  %v395_v55 = vld [vmem:[%s1428_s6 + $0x1c0] sm:$0xff]  ;;  %v396_v57 = vld [vmem:[%s1428_s6 + $0x1c8] sm:$0xff]  ;;  %v1084_v59 = vcombine.low %v387_v47, %v391_v48  ;;  %v369_v27 = vld [vmem:[%s1428_s6 + $0xf0] sm:$0xff] }
  0x4c   : > { %v399_v56 = vld [vmem:[%s1428_s6 + $0x1e0] sm:$0xff]  ;;  %v400_v58 = vld [vmem:[%s1428_s6 + $0x1e8] sm:$0xff]  ;;  %v1086_v60 = vcombine.low %v388_v49, %v392_v50  ;;  %v366_v28 = vld [vmem:[%s1428_s6 + $0xd8] sm:$0xff]  ;;  %v1056_v30 = vcombine.low %v357_v18, %v361_v19  ;;  %v1065_v32 = vcombine.high %v365_v26, %v369_v27 }
  0x4d   : > { %v1093_v61 = vcombine.high %v395_v55, %v399_v56  ;;  %v1095_v62 = vcombine.high %v396_v57, %v400_v58  ;;  %v1092_v4 = vcombine.low %v395_v55, %v399_v56  ;;  %v337_v5 = vld [vmem:[%s1569_s0] sm:$0xff]  ;;  %v1094_v6 = vcombine.low %v396_v57, %v400_v58  ;;  %v370_v29 = vld [vmem:[%s1428_s6 + $0xf8] sm:$0xff]  ;;  %v373_v34 = vld [vmem:[%s1428_s6 + $0x110] sm:$0xff] }
  0x4e   : > { %772 = vmatpush1.bf16.msra.mxu0 %v1060_v35  ;;  %813 = vmatpush1.bf16.msra.mxu1 %v1062_v36  ;;  %v1471_v11 = vpack.c.bf16 %v337_v5, %v337_v5  ;;  %v1067_v33 = vcombine.high %v366_v28, %v370_v29  ;;  %v377_v35 = vld [vmem:[%s1428_s6 + $0x130] sm:$0xff]  ;;  %v374_v36 = vld [vmem:[%s1428_s6 + $0x118] sm:$0xff] }
  0x4f   : > { %773 = vmatprep.subr.bf16.mxu0 %v1069_v37  ;;  %814 = vmatprep.subr.bf16.mxu1 %v1071_v38  ;;  %v378_v37 = vld [vmem:[%s1428_s6 + $0x138] sm:$0xff]  ;;  %v1064_v38 = vcombine.low %v365_v26, %v369_v27  ;;  %v1073_v39 = vcombine.high %v373_v34, %v377_v35  ;;  %v381_v41 = vld [vmem:[%s1428_s6 + $0x150] sm:$0xff] }
  0x50   : > { %v1075_v40 = vcombine.high %v374_v36, %v378_v37  ;;  %v385_v42 = vld [vmem:[%s1428_s6 + $0x170] sm:$0xff] }
  0x51   : > { %v1081_v47 = vcombine.high %v381_v41, %v385_v42  ;;  %v389_v49 = vld [vmem:[%s1428_s6 + $0x190] sm:$0xff] }
  0x52   : > { %774 = vmatpush1.bf16.msra.mxu0 %v1068_v43  ;;  %815 = vmatpush1.bf16.msra.mxu1 %v1070_v44  ;;  %v382_v43 = vld [vmem:[%s1428_s6 + $0x158] sm:$0xff]  ;;  %v393_v50 = vld [vmem:[%s1428_s6 + $0x1b0] sm:$0xff] }
  0x53   : > { %775 = vmatprep.subr.bf16.mxu0 %v1077_v45  ;;  %816 = vmatprep.subr.bf16.mxu1 %v1079_v46  ;;  %v386_v44 = vld [vmem:[%s1428_s6 + $0x178] sm:$0xff]  ;;  %v1072_v45 = vcombine.low %v373_v34, %v377_v35  ;;  %v1074_v46 = vcombine.low %v374_v36, %v378_v37  ;;  %v1089_v55 = vcombine.high %v389_v49, %v393_v50  ;;  %v397_v57 = vld [vmem:[%s1428_s6 + $0x1d0] sm:$0xff] }
  0x54   : > { %v1083_v48 = vcombine.high %v382_v43, %v386_v44  ;;  %v401_v58 = vld [vmem:[%s1428_s6 + $0x1f0] sm:$0xff] }
  0x55   : > { %v1097_v63 = vcombine.high %v397_v57, %v401_v58  ;;  %v1096_v2 = vcombine.low %v397_v57, %v401_v58 }
  0x56   : > { %776 = vmatpush1.bf16.msra.mxu0 %v1076_v51  ;;  %817 = vmatpush1.bf16.msra.mxu1 %v1078_v52  ;;  %v390_v51 = vld [vmem:[%s1428_s6 + $0x198] sm:$0xff] }
  0x57   : > { %777 = vmatprep.subr.bf16.mxu0 %v1085_v53  ;;  %818 = vmatprep.subr.bf16.mxu1 %v1087_v54  ;;  %v394_v52 = vld [vmem:[%s1428_s6 + $0x1b8] sm:$0xff]  ;;  %v1080_v53 = vcombine.low %v381_v41, %v385_v42  ;;  %v1082_v54 = vcombine.low %v382_v43, %v386_v44 }
  0x58   : > { %v1091_v56 = vcombine.high %v390_v51, %v394_v52 }
  0x5a   : > { %778 = vmatpush1.bf16.msra.mxu0 %v1084_v59  ;;  %819 = vmatpush1.bf16.msra.mxu1 %v1086_v60  ;;  %v398_v59 = vld [vmem:[%s1428_s6 + $0x1d8] sm:$0xff] }
  0x5b   : > { %779 = vmatprep.subr.bf16.mxu0 %v1093_v61  ;;  %820 = vmatprep.subr.bf16.mxu1 %v1095_v62  ;;  %v402_v60 = vld [vmem:[%s1428_s6 + $0x1f8] sm:$0xff]  ;;  %v1088_v61 = vcombine.low %v389_v49, %v393_v50  ;;  %v1090_v62 = vcombine.low %v390_v51, %v394_v52  ;;  %s1153_s6 = scalar_lea.vmem %s1152_s5, 2048 }
  0x5c   : > { %v1099_v1 = vcombine.high %v398_v59, %v402_v60  ;;  %v1098_v3 = vcombine.low %v398_v59, %v402_v60  ;;  %p1155_p4 = scmp.lt.s32.totalorder %s1153_s6, %s1147_s29 }
  0x5e   : > { %780 = vmatpush1.bf16.msra.mxu0 %v1092_v4  ;;  %821 = vmatpush1.bf16.msra.mxu1 %v1094_v6  ;;  %v405_v4 = vlaneseq  ;;  %p1156_p5 = por %p1155_p4, %p1154_p3 }
  0x5f   : > { %847 = vmatprep.subr.bf16.mxu0 %v1041_v7  ;;  %888 = vmatprep.subr.bf16.mxu1 %v1043_v8  ;;  %v403_v7 = vld [vmem:[%s333_s17] sm:$0xff] }
  0x60   : > { %v406_v5 = vshrl.u32 %v405_v4, 7  ;;  %p1157_p7 = pnand %p1156_p5, %p1150_p2 }
  0x61   : > { %798 = vmatmul.mubr.bf16.vlgmr.msra.gmra.mrb[0].mxu0 %v1471_v11  ;;  %839 = vmatmul.mubr.bf16.vlgmr.msra.gmra.mrb[0].mxu1 %v1471_v11 }
  0x62   : > { %848 = vmatpush1.bf16.msra.mxu0 %v1040_v14  ;;  %889 = vmatpush1.bf16.msra.mxu1 %v1042_v15  ;;  %v407_v6 = vsub.s32 0, %v406_v5  ;;  %v415_v8 = vsub.s32 2, %v406_v5  ;;  %v411_v9 = vsub.s32 1, %v406_v5  ;;  %v419_v10 = vsub.s32 3, %v406_v5 }
  0x63   : > { %849 = vmatprep.subr.bf16.mxu0 %v1049_v16  ;;  %890 = vmatprep.subr.bf16.mxu1 %v1051_v17  ;;  %v423_v27 = vsub.s32 4, %v406_v5 }
  0x64   : > { %879 = vmatprep.mubr.bf16.mxu0 %v1211_v0  ;;  %920 = vmatprep.mubr.bf16.mxu1 %v1211_v0  ;;  %v1066_v0 = vcombine.low %v366_v28, %v370_v29  ;;  %v408_v12 = vrot.slane %v403_v7, %v407_v6  ;;  %v416_v13 = vrot.slane %v403_v7, %v415_v8  ;;  %v431_v28 = vsub.s32 6, %v406_v5 }
  0x65   : > { %v412_v14 = vrot.slane %v403_v7, %v411_v9  ;;  %v420_v15 = vrot.slane %v403_v7, %v419_v10  ;;  %v427_v29 = vsub.s32 5, %v406_v5 }
  0x66   : > { %850 = vmatpush1.bf16.msra.mxu0 %v1048_v22  ;;  %891 = vmatpush1.bf16.msra.mxu1 %v1050_v23 }
  0x67   : > { %851 = vmatprep.subr.bf16.mxu0 %v1057_v24  ;;  %892 = vmatprep.subr.bf16.mxu1 %v1059_v25 }
  0x6a   : > { %852 = vmatpush1.bf16.msra.mxu0 %v1056_v30  ;;  %893 = vmatpush1.bf16.msra.mxu1 %v1058_v31  ;;  %v435_v30 = vsub.s32 7, %v406_v5  ;;  %v424_v31 = vrot.slane %v403_v7, %v423_v27 }
  0x6b   : > { %853 = vmatprep.subr.bf16.mxu0 %v1065_v32  ;;  %894 = vmatprep.subr.bf16.mxu1 %v1067_v33  ;;  %v432_v32 = vrot.slane %v403_v7, %v431_v28  ;;  %v428_v33 = vrot.slane %v403_v7, %v427_v29 }
  0x6c   : > { %v436_v34 = vrot.slane %v403_v7, %v435_v30 }
  0x6e   : > { %854 = vmatpush1.bf16.msra.mxu0 %v1064_v38  ;;  %895 = vmatpush1.bf16.msra.mxu1 %v1066_v0 }
  0x6f   : > { %855 = vmatprep.subr.bf16.mxu0 %v1073_v39  ;;  %896 = vmatprep.subr.bf16.mxu1 %v1075_v40 }
  0x72   : > { %856 = vmatpush1.bf16.msra.mxu0 %v1072_v45  ;;  %897 = vmatpush1.bf16.msra.mxu1 %v1074_v46 }
  0x73   : > { %857 = vmatprep.subr.bf16.mxu0 %v1081_v47  ;;  %898 = vmatprep.subr.bf16.mxu1 %v1083_v48 }
  0x76   : > { %858 = vmatpush1.bf16.msra.mxu0 %v1080_v53  ;;  %899 = vmatpush1.bf16.msra.mxu1 %v1082_v54 }
  0x77   : > { %859 = vmatprep.subr.bf16.mxu0 %v1089_v55  ;;  %900 = vmatprep.subr.bf16.mxu1 %v1091_v56 }
  0x7a   : > { %860 = vmatpush1.bf16.msra.mxu0 %v1088_v61  ;;  %901 = vmatpush1.bf16.msra.mxu1 %v1090_v62 }
  0x7b   : > { %861 = vmatprep.subr.bf16.mxu0 %v1097_v63  ;;  %902 = vmatprep.subr.bf16.mxu1 %v1099_v1 }
  0x7e   : > { %862 = vmatpush1.bf16.msra.mxu0 %v1096_v2  ;;  %903 = vmatpush1.bf16.msra.mxu1 %v1098_v3 }
  0x81   : > { %880 = vmatmul.mubr.bf16.vlgmr.msra.gmra.mrb[4].mxu0 %v1471_v11  ;;  %921 = vmatmul.mubr.bf16.vlgmr.msra.gmra.mrb[4].mxu1 %v1471_v11 }
 0x134   : > { %v799_v11 = vpop.f32.mrb[0].mxu0  ;;  %v840_v17 = vpop.f32.mrb[0].mxu1 }
 0x135   : > { %v800_v16 = vadd.f32 %v799_v11, %v408_v12  ;;  %v801_v18 = vpop.f32.mrb[1].mxu0  ;;  %v841_v19 = vadd.f32 %v840_v17, %v416_v13  ;;  %v842_v21 = vpop.f32.mrb[1].mxu1 }
 0x136   : > { %v802_v20 = vadd.f32 %v801_v18, %v412_v14  ;;  %v803_v22 = vpop.f32.mrb[2].mxu0  ;;  %v843_v23 = vadd.f32 %v842_v21, %v420_v15  ;;  %v844_v24 = vpop.f32.mrb[2].mxu1 }
 0x137   : > { %929 = vst [vmem:[%s1510_s20] sm:$0xff] %v800_v16  ;;  %v804_v25 = vpop.f32.mrb[3].mxu0  ;;  %931 = vst [vmem:[%s1510_s20 + $0x10] sm:$0xff] %v841_v19  ;;  %v845_v26 = vpop.f32.mrb[3].mxu1 }
 0x138   : > { %930 = vst [vmem:[%s1510_s20 + $0x8] sm:$0xff] %v802_v20  ;;  %932 = vst [vmem:[%s1510_s20 + $0x18] sm:$0xff] %v843_v23 }
 0x154   : > { %v881_v35 = vpop.f32.mrb[4].mxu0  ;;  %v922_v37 = vpop.f32.mrb[4].mxu1 }
 0x155   : > { %v882_v36 = vadd.f32 %v881_v35, %v424_v31  ;;  %v883_v38 = vpop.f32.mrb[5].mxu0  ;;  %v923_v0 = vadd.f32 %v922_v37, %v432_v32  ;;  %v924_v40 = vpop.f32.mrb[5].mxu1 }
 0x156   : > { %v884_v39 = vadd.f32 %v883_v38, %v428_v33  ;;  %v885_v41 = vpop.f32.mrb[6].mxu0  ;;  %v925_v42 = vadd.f32 %v924_v40, %v436_v34  ;;  %v926_v43 = vpop.f32.mrb[6].mxu1 }
 0x157   : > { %933 = vst [vmem:[%s1510_s20 + $0x20] sm:$0xff] %v882_v36  ;;  %v886_v44 = vpop.f32.mrb[7].mxu0  ;;  %935 = vst [vmem:[%s1510_s20 + $0x30] sm:$0xff] %v923_v0  ;;  %v927_v45 = vpop.f32.mrb[7].mxu1 }
 0x158   : > { %934 = vst [vmem:[%s1510_s20 + $0x28] sm:$0xff] %v884_v39  ;;  %936 = vst [vmem:[%s1510_s20 + $0x38] sm:$0xff] %v925_v42 }
 0x159   : > { %1160 = shalt.err (!%p1157_p7)
}
 0x15a   : > { %s1161_s4 = scalar_lea.hbm %s1522_s16, 1024  ;;  %s1165_s9 = scalar_lea.hbm %s1572_s3, 2048 }
 0x15b   : > { %p1162_p10 = scmp.ne.s32.totalorder %s1522_s16, %s1161_s4  ;;  %p1166_p13 = scmp.lt.u32.totalorder %s1522_s16, %s1572_s3 }
 0x15c   : > { %p1167_p0 = scmp.lt.u32.totalorder %s1165_s9, %s1161_s4  ;;  %p1169_p2 = scmp.lt.u32.totalorder %s1161_s4, %s1522_s16 }
 0x15d   : > { %p1163_p11 = pnand %p1162_p10, %p1272_p6 }
 0x15e   : > { %p1168_p1 = por %p1167_p0, %p1166_p13 }
 0x15f   : > { %p1164_p12 = pneg %p1163_p11 }
 0x160   : > { %p1170_p3 = por %p1169_p2, %p1168_p1 }
 0x162   : > { %p1171_p4 = pnand %p1170_p3, %p1164_p12 }
 0x164   : > { %1174 = shalt.err (!%p1171_p4)
}
 0x165   : > { %1107 = dma.vmem_to_hbm [thread:$0]  (%p1272_p6), %s1524_s25, 1024, %s1522_s16, %s938_s28  }
 0x166 PF: > { %s964_s17 = sand.u32 1, %s1197_s12   ;;  %p1110_p5 = pnand %p1028_p9, %p1276_p8 }
 0x167   : > { %s965_s19 = scalar_lea.sflag [#allocation4], %s964_s17 }
 0x168   : > { %1192 = dma.done.wait (!%p1110_p5), %s965_s19, 1024  }
 0x169   : > { %1194 = vsyncadd (!%p1110_p5), %s965_s19, 4294966272  ;;  %p13_p7 = scmp.ge.s32.totalorder %s1258_s18, 4   ;;  %s1575_s12 = smov %s1201_s13 }
 0x16a   : > { %s1576_s13 = smov %s1205_s14  ;;  %s1577_s14 = smov %s1270_s21 }
 0x16b   : > { %s1578_s15 = smov %s1258_s18  ;;  %15 = sbr.rel (!%p13_p7) target bundleno = 3 (0x3), region = 98 }
 0x172   :  { %970 = vsyncpa [#allocation4], 1 }
 0x173   :  { %972 = vsyncpa [#allocation4 + $0x1], 1 }

// kernel: decoder_forward.2
= control target key start
LH: loop header
LB: loop body
LE: loop exit
PB: predicated region body
PF: predicated region fallthrough
CT: control target
= control target key end

     0   :  { %19 = vsyncpa [#allocation3], 0  ;;  %v2019_v3 = vmov 0.0   ;;  %vm2020_vm0 = vmmov 0   ;;  %s3133_s0 = inlined_call_operand.vmem [shape: f32[8,32], index: 0, kind: input, shape index: {}]   ;;  %s3134_s1 = inlined_call_operand.vmem [shape: f32[8,128], index: 1, kind: input, shape index: {}]   ;;  %s3135_s2 = inlined_call_operand.vmem [shape: f32[8,128], index: 2, kind: input, shape index: {}]   ;;  %s3136_s3 = inlined_call_operand.vmem [shape: bf16[8,16,128], index: 3, kind: input, shape index: {}]   ;;  %s3137_s4 = inlined_call_operand.vmem [shape: f32[256,128], index: 4, kind: input, shape index: {}]   ;;  %s3138_s5 = inlined_call_operand.vmem [shape: f32[1,128], index: 5, kind: input, shape index: {}]   ;;  %s3139_s6 = inlined_call_operand.vmem [shape: f32[1,128], index: 6, kind: input, shape index: {}]   ;;  %s3140_s7 = inlined_call_operand.vmem [shape: f32[160,512], index: 7, kind: input, shape index: {}]   ;;  %s3141_s8 = inlined_call_operand.vmem [shape: f32[1,512], index: 8, kind: input, shape index: {}]   ;;  %s3142_s9 = inlined_call_operand.vmem [shape: f32[128,512], index: 9, kind: input, shape index: {}]   ;;  %s3143_s10 = inlined_call_operand.vmem [shape: f32[1,512], index: 10, kind: input, shape index: {}]   ;;  %s3144_s11 = inlined_call_operand.vmem [shape: f32[8,128], index: 11, kind: output, shape index: {0}]   ;;  %s3145_s12 = inlined_call_operand.hbm [shape: f32[8,128], index: 12, kind: output, shape index: {1}]   ;;  %s3146_s13 = inlined_call_operand.hbm [shape: f32[8,16], index: 13, kind: output, shape index: {2}]  }
   0x1   :  { %v64_v0 = vld [vmem:[%s3137_s4] sm:$0xff]  ;;  %v65_v1 = vld [vmem:[%s3137_s4 + $0x8] sm:$0xff]  ;;  %1805 = vmatprep.subr.bf16.mxu0 %v2019_v3  ;;  %v66_v6 = vld [vmem:[%s3137_s4 + $0x10] sm:$0xff]  ;;  %1821 = vmatprep.mubr.msk.bf16.mxu0 %vm2020_vm0, %v2019_v3 }
   0x2   :  { %v88_v2 = vld [vmem:[%s3137_s4 + $0x80] sm:$0xff]  ;;  %v80_v4 = vpack.c.bf16 %v65_v1, %v64_v0  ;;  %v89_v5 = vld [vmem:[%s3137_s4 + $0x88] sm:$0xff]  ;;  %v67_v7 = vld [vmem:[%s3137_s4 + $0x18] sm:$0xff] }
   0x3   :  { %v104_v8 = vpack.c.bf16 %v89_v5, %v88_v2  ;;  %v90_v9 = vld [vmem:[%s3137_s4 + $0x90] sm:$0xff]  ;;  %v91_v10 = vld [vmem:[%s3137_s4 + $0x98] sm:$0xff]  ;;  %v81_v11 = vpack.c.bf16 %v67_v7, %v66_v6  ;;  %v92_v13 = vld [vmem:[%s3137_s4 + $0xa0] sm:$0xff] }
   0x4   :  { %1806 = vmatpush3.bf16.msra.mxu0 %v80_v4  ;;  %v105_v12 = vpack.c.bf16 %v91_v10, %v90_v9  ;;  %v93_v14 = vld [vmem:[%s3137_s4 + $0xa8] sm:$0xff]  ;;  %v68_v15 = vld [vmem:[%s3137_s4 + $0x20] sm:$0xff]  ;;  %v94_v19 = vld [vmem:[%s3137_s4 + $0xb0] sm:$0xff] }
   0x5   :  { %1825 = vmatprep.subr.bf16.mxu1 %v104_v8  ;;  %1807 = vmatprep.subr.bf16.mxu0 %v2019_v3  ;;  %v69_v16 = vld [vmem:[%s3137_s4 + $0x28] sm:$0xff]  ;;  %v106_v17 = vpack.c.bf16 %v93_v14, %v92_v13  ;;  %v95_v20 = vld [vmem:[%s3137_s4 + $0xb8] sm:$0xff]  ;;  %v70_v21 = vld [vmem:[%s3137_s4 + $0x30] sm:$0xff] }
   0x6   :  { %1826 = vmatpush3.bf16.msra.mxu1 %v104_v8  ;;  %v82_v18 = vpack.c.bf16 %v69_v16, %v68_v15  ;;  %v71_v22 = vld [vmem:[%s3137_s4 + $0x38] sm:$0xff]  ;;  %v107_v23 = vpack.c.bf16 %v95_v20, %v94_v19  ;;  %v96_v25 = vld [vmem:[%s3137_s4 + $0xc0] sm:$0xff]  ;;  %v97_v26 = vld [vmem:[%s3137_s4 + $0xc8] sm:$0xff] }
   0x7   :  { %1827 = vmatprep.subr.bf16.mxu1 %v105_v12  ;;  %v83_v24 = vpack.c.bf16 %v71_v22, %v70_v21  ;;  %v47_v27 = vld [vmem:[%s3136_s3] sm:$0xff]   ;;  %v73_v29 = vld [vmem:[%s3137_s4 + $0x48] sm:$0xff] }
   0x8   :  { %1808 = vmatpush3.bf16.msra.mxu0 %v81_v11  ;;  %v72_v28 = vld [vmem:[%s3137_s4 + $0x40] sm:$0xff] }
   0x9   :  { %1809 = vmatprep.subr.bf16.mxu0 %v2019_v3 }
   0xa   :  { %1828 = vmatpush3.bf16.msra.mxu1 %v105_v12 }
   0xb   :  { %1829 = vmatprep.subr.bf16.mxu1 %v106_v17 }
   0xc   :  { %1810 = vmatpush3.bf16.msra.mxu0 %v82_v18 }
   0xd   :  { %1811 = vmatprep.subr.bf16.mxu0 %v2019_v3 }
   0xe   :  { %1830 = vmatpush3.bf16.msra.mxu1 %v106_v17 }
   0xf   :  { %20 = vsyncpa [#allocation5], 0  ;;  %1831 = vmatprep.subr.bf16.mxu1 %v107_v23  ;;  %v108_v30 = vpack.c.bf16 %v97_v26, %v96_v25  ;;  %1841 = vmatprep.mubr.bf16.mxu1 %v47_v27  ;;  %v84_v31 = vpack.c.bf16 %v73_v29, %v72_v28  ;;  %v98_v32 = vld [vmem:[%s3137_s4 + $0xd0] sm:$0xff]  ;;  %v99_v33 = vld [vmem:[%s3137_s4 + $0xd8] sm:$0xff]  ;;  %v2021_v59 = vmov 1966171168   ;;  %v302_v61 = vlaneseq }
  0x10   :  { %1812 = vmatpush3.bf16.msra.mxu0 %v83_v24  ;;  %v74_v34 = vld [vmem:[%s3137_s4 + $0x50] sm:$0xff]  ;;  %v75_v35 = vld [vmem:[%s3137_s4 + $0x58] sm:$0xff]  ;;  %v109_v36 = vpack.c.bf16 %v99_v33, %v98_v32  ;;  %v100_v38 = vld [vmem:[%s3137_s4 + $0xe0] sm:$0xff]  ;;  %v300_v60 = vunpack.c.l.s4 %v2021_v59  ;;  %vm524_vm1 = vcmask 130112   ;;  %vm589_vm2 = vcmask 1041409   ;;  %s2023_s18 = smov [#allocation4]  }
  0x11   :  { %1813 = vmatprep.subr.bf16.mxu0 %v2019_v3  ;;  %v85_v37 = vpack.c.bf16 %v75_v35, %v74_v34  ;;  %v101_v39 = vld [vmem:[%s3137_s4 + $0xe8] sm:$0xff]  ;;  %v76_v40 = vld [vmem:[%s3137_s4 + $0x60] sm:$0xff]  ;;  %v102_v44 = vld [vmem:[%s3137_s4 + $0xf0] sm:$0xff]  ;;  %v2231_v63 = vshrl.u32 %v302_v61, 7  ;;  %vm591_vm3 = vcmask 1042434   ;;  %vm593_vm4 = vcmask 1043459  }
  0x12   :  { %1832 = vmatpush3.bf16.msra.mxu1 %v107_v23  ;;  %v77_v41 = vld [vmem:[%s3137_s4 + $0x68] sm:$0xff]  ;;  %v110_v42 = vpack.c.bf16 %v101_v39, %v100_v38  ;;  %v103_v45 = vld [vmem:[%s3137_s4 + $0xf8] sm:$0xff]  ;;  %v78_v46 = vld [vmem:[%s3137_s4 + $0x70] sm:$0xff]  ;;  %v301_v62 = vunpack.c.0.s8 %v300_v60  ;;  %vm595_vm5 = vcmask 1044484   ;;  %vm597_vm6 = vcmask 1045509   ;;  %s1751_s19 = sshll.u32 %s2023_s18, 4  ;;  %s1752_s19 = int_to_ptr.vmem [resolvable:$true] %s1751_s19 }
  0x13   :  { %1833 = vmatprep.subr.bf16.mxu1 %v108_v30  ;;  %v86_v43 = vpack.c.bf16 %v77_v41, %v76_v40  ;;  %v79_v47 = vld [vmem:[%s3137_s4 + $0x78] sm:$0xff]  ;;  %v111_v48 = vpack.c.bf16 %v103_v45, %v102_v44  ;;  %v45_v50 = vld [vmem:[%s3134_s1] sm:$0xff]  ;;  %v49_v51 = vld [vmem:[%s3136_s3 + $0x8] sm:$0xff]   ;;  %v2235_v5 = vsub.s32 0, %v2231_v63  ;;  %vm599_vm7 = vcmask 1046534   ;;  %s1971_s20 = scalar_lea.vmem %s1752_s19, 128  ;;  %p1976_p1 = scmp.lt.s32.totalorder %s1752_s19, %s1752_s19 }
  0x14   :  { %1814 = vmatpush3.bf16.msra.mxu0 %v84_v31  ;;  %v87_v49 = vpack.c.bf16 %v79_v47, %v78_v46  ;;  %v2209_v52 = vpack.c.bf16 %v45_v50, %v45_v50  ;;  %v51_v53 = vld [vmem:[%s3136_s3 + $0x10] sm:$0xff]   ;;  %v53_v54 = vld [vmem:[%s3136_s3 + $0x18] sm:$0xff]   ;;  %v55_v55 = vld [vmem:[%s3136_s3 + $0x20] sm:$0xff]   ;;  %v304_v0 = vsub.s32 %v301_v62, %v2231_v63  ;;  %vm601_vm8 = vcmask 1047559   ;;  %p1972_p0 = scmp.ne.s32.totalorder %s1752_s19, %s1971_s20  ;;  %p1977_p2 = scmp.lt.s32.totalorder %s1971_s20, %s1971_s20 }
  0x15   :  { %1815 = vmatprep.subr.bf16.mxu0 %v2019_v3  ;;  %v57_v56 = vld [vmem:[%s3136_s3 + $0x28] sm:$0xff]   ;;  %v59_v57 = vld [vmem:[%s3136_s3 + $0x30] sm:$0xff]   ;;  %v61_v58 = vld [vmem:[%s3136_s3 + $0x38] sm:$0xff]   ;;  %vm604_vm9 = vcmask 130048   ;;  %vm1387_vm10 = vcmask 261120  }
  0x16   :  { %1834 = vmatpush3.bf16.msra.mxu1 %v108_v30  ;;  %v2241_v17 = vld [vmem:[%s3138_s5] ss:$0 sm:$0xff]  ;;  %p1978_p3 = por %p1977_p2, %p1976_p1 }
  0x17   :  { %1835 = vmatprep.subr.bf16.mxu1 %v109_v36 }
  0x18   :  { %1816 = vmatpush3.bf16.msra.mxu0 %v85_v37  ;;  %p1979_p4 = pnand %p1978_p3, %p1972_p0 }
  0x19   :  { %1817 = vmatprep.subr.bf16.mxu0 %v2019_v3 }
  0x1a   :  { %1836 = vmatpush3.bf16.msra.mxu1 %v109_v36 }
  0x1b   :  { %1837 = vmatprep.subr.bf16.mxu1 %v110_v42 }
  0x1c   :  { %1818 = vmatpush3.bf16.msra.mxu0 %v86_v43 }
  0x1d   :  { %1819 = vmatprep.subr.bf16.mxu0 %v2019_v3 }
  0x1e   :  { %1838 = vmatpush3.bf16.msra.mxu1 %v110_v42 }
  0x1f   :  { %1839 = vmatprep.subr.bf16.mxu1 %v111_v48 }
  0x20   :  { %1820 = vmatpush3.bf16.msra.mxu0 %v87_v49 }
  0x22   :  { %1840 = vmatpush3.bf16.msra.mxu1 %v111_v48 }
  0x23   :  { %1822 = vmatmul.mubr.bf16.vlgmr.msra.gmra.mrb[0].mxu0 %v2209_v52 }
  0x25   :  { %1842 = vmatmul.mubr.bf16.vlgmr.msra.gmra.mrb[0].mxu1 %v49_v51  ;;  %v2259_v51 = vld [vmem:[%s3139_s6] ss:$0 sm:$0xff] }
  0x26   :  { %1845 = vmatprep.mubr.bf16.mxu1 %v51_v53 }
  0x2d   :  { %1846 = vmatmul.mubr.bf16.gmra.mrb[4].mxu1 %v53_v54 }
  0x2e   :  { %1849 = vmatprep.mubr.bf16.mxu1 %v55_v55 }
  0x35   :  { %1850 = vmatmul.mubr.bf16.gmra.mrb[8].mxu1 %v57_v56 }
  0x36   :  { %1853 = vmatprep.mubr.bf16.mxu1 %v59_v57 }
  0x3d   :  { %1854 = vmatmul.mubr.bf16.gmra.mrb[12].mxu1 %v61_v58 }
  0xf6   :  { %v146_v1 = vpop.f32.mrb[0].mxu0 }
  0xf7   :  { %v298_v2 = vcombine.high %v146_v1, %v146_v1  ;;  %v305_v3 = vrot.slane %v146_v1, %v304_v0  ;;  %v1823_v4 = vpop.f32.mrb[1].mxu0 }
  0xf8   :  { %v149_v6 = vpop.f32.mrb[2].mxu0  ;;  %v1843_v7 = vpop.f32.mrb[0].mxu1 }
  0xf9   :  { %v313_v8 = vcombine.high %v305_v3, %v305_v3  ;;  %v321_v9 = vrot.slane %v305_v3, %v304_v0  ;;  %v1824_v10 = vpop.f32.mrb[3].mxu0  ;;  %v234_v11 = vpop.f32.mrb[1].mxu1  ;;  %v312_v12 = vrot.slane %v298_v2, %v304_v0 }
  0xfa   :  { %v1844_v13 = vpop.f32.mrb[2].mxu1 }
  0xfb   :  { %v335_v14 = vrot.slane %v313_v8, %v304_v0  ;;  %v350_v15 = vrot.slane %v321_v9, %v2235_v5  ;;  %v237_v16 = vpop.f32.mrb[3].mxu1  ;;  %v343_v18 = vcombine.high %v321_v9, %v321_v9  ;;  %v314_v23 = vcombine.high %v312_v12, %v312_v12 }
  0xfc   :  { %v328_v42 = vrot.slane %v312_v12, %v304_v0 }
  0xfd   :  { %v354_v19 = vrot.slane %v335_v14, %v2235_v5  ;;  %v387_v20 = vadd.f32 %v350_v15, %v234_v11  ;;  %v388_v21 = vadd.f32 %v350_v15, %v237_v16  ;;  %v345_v22 = vcombine.high %v335_v14, %v335_v14 }
  0xfe   :  { %v358_v30 = vrot.slane %v343_v18, %v2235_v5  ;;  %v342_v39 = vrot.slane %v314_v23, %v304_v0  ;;  %v366_v47 = vrot.slane %v328_v42, %v2235_v5  ;;  %v344_v1 = vcombine.high %v328_v42, %v328_v42 }
  0xff   :  { %v389_v24 = vadd.f32 %v1843_v7, %v354_v19  ;;  %v410_v25 = vadd.f32 %v2241_v17, %v387_v20  ;;  %v390_v26 = vadd.f32 %v1844_v13, %v354_v19  ;;  %v411_v27 = vadd.f32 %v2241_v17, %v388_v21 }
 0x100   :  { %v1847_v28 = vpop.f32.mrb[4].mxu1  ;;  %v362_v29 = vrot.slane %v345_v22, %v2235_v5  ;;  %v370_v45 = vrot.slane %v342_v39, %v2235_v5  ;;  %v346_v59 = vcombine.high %v342_v39, %v342_v39  ;;  %v374_v10 = vrot.slane %v344_v1, %v2235_v5 }
 0x101   :  { %v412_v31 = vadd.f32 %v2241_v17, %v389_v24  ;;  %1881 = vtanh.f32 %v410_v25  ;;  %v413_v32 = vadd.f32 %v2241_v17, %v390_v26  ;;  %v250_v33 = vpop.f32.mrb[5].mxu1 }
 0x102   :  { %1883 = vtanh.f32 %v411_v27  ;;  %v393_v34 = vadd.f32 %v1847_v28, %v362_v29  ;;  %v391_v35 = vadd.f32 %v358_v30, %v250_v33  ;;  %v1848_v36 = vpop.f32.mrb[6].mxu1  ;;  %v378_v8 = vrot.slane %v346_v59, %v2235_v5 }
 0x103   :  { %1885 = vtanh.f32 %v412_v31  ;;  %v394_v37 = vadd.f32 %v1848_v36, %v362_v29  ;;  %v253_v38 = vpop.f32.mrb[7].mxu1 }
 0x104   :  { %v414_v40 = vadd.f32 %v2241_v17, %v391_v35  ;;  %v392_v41 = vadd.f32 %v358_v30, %v253_v38  ;;  %1887 = vtanh.f32 %v413_v32  ;;  %v416_v44 = vadd.f32 %v2241_v17, %v393_v34 }
 0x105   :  { %v417_v43 = vadd.f32 %v2241_v17, %v394_v37 }
 0x106   :  { %1889 = vtanh.f32 %v414_v40  ;;  %v415_v48 = vadd.f32 %v2241_v17, %v392_v41 }
 0x107   :  { %1891 = vtanh.f32 %v417_v43 }
 0x108   :  { %v1851_v46 = vpop.f32.mrb[8].mxu1  ;;  %1893 = vtanh.f32 %v416_v44 }
 0x109   :  { %v397_v49 = vadd.f32 %v1851_v46, %v370_v45  ;;  %v266_v50 = vpop.f32.mrb[9].mxu1  ;;  %1895 = vtanh.f32 %v415_v48 }
 0x10a   :  { %v395_v53 = vadd.f32 %v366_v47, %v266_v50  ;;  %v1852_v54 = vpop.f32.mrb[10].mxu1 }
 0x10b   :  { %v1882_v55 = vpop.eup %1881  ;;  %v420_v56 = vadd.f32 %v2241_v17, %v397_v49  ;;  %v398_v57 = vadd.f32 %v1852_v54, %v370_v45  ;;  %v269_v58 = vpop.f32.mrb[11].mxu1 }
 0x10c   :  { %v1884_v60 = vpop.eup %1883  ;;  %v396_v62 = vadd.f32 %v366_v47, %v269_v58  ;;  %v449_v0 = vmul.f32 %v1882_v55, %v2259_v51  ;;  %v418_v7 = vadd.f32 %v2241_v17, %v395_v53 }
 0x10d   :  { %v1886_v2 = vpop.eup %1885  ;;  %v421_v3 = vadd.f32 %v2241_v17, %v398_v57  ;;  %1897 = vtanh.f32 %v420_v56  ;;  %v450_v11 = vmul.f32 %v1884_v60, %v2259_v51  ;;  %v514_v56 = vand.u32 127, %v302_v61 }
 0x10e   :  { %465 = vadd.xlane.f32.xlu0 %v449_v0  ;;  %v451_v4 = vmul.f32 %v1886_v2, %v2259_v51  ;;  %v1888_v6 = vpop.eup %1887  ;;  %v419_v13 = vadd.f32 %v2241_v17, %v396_v62 }
 0x10f   :  { %1899 = vtanh.f32 %v421_v3  ;;  %v452_v19 = vmul.f32 %v1888_v6, %v2259_v51  ;;  %v519_v58 = vadd.s32 4294967288, %v514_v56  ;;  %v2310_v0 = vsub.s32 %v514_v56, %v2231_v63 }
 0x110   :  { %v1855_v9 = vpop.f32.mrb[12].mxu1  ;;  %469 = vadd.xlane.f32.xlu1 %v451_v4  ;;  %v1890_v12 = vpop.eup %1889  ;;  %1901 = vtanh.f32 %v418_v7 }
 0x111   :  { %v401_v14 = vadd.f32 %v1855_v9, %v378_v8  ;;  %v282_v15 = vpop.f32.mrb[13].mxu1  ;;  %v1892_v20 = vpop.eup %1891  ;;  %v453_v25 = vmul.f32 %v1890_v12, %v2259_v51  ;;  %1903 = vtanh.f32 %v419_v13 }
 0x112   :  { %v399_v16 = vadd.f32 %v374_v10, %v282_v15  ;;  %v1856_v18 = vpop.f32.mrb[14].mxu1  ;;  %467 = vadd.xlane.f32.xlu0 %v450_v11  ;;  %v1894_v26 = vpop.eup %1893  ;;  %v456_v28 = vmul.f32 %v1892_v20, %v2259_v51 }
 0x113   :  { %v402_v21 = vadd.f32 %v1856_v18, %v378_v8  ;;  %v285_v22 = vpop.f32.mrb[15].mxu1  ;;  %v1896_v29 = vpop.eup %1895  ;;  %v424_v30 = vadd.f32 %v2241_v17, %v401_v14  ;;  %v455_v31 = vmul.f32 %v1894_v26, %v2259_v51 }
 0x114   :  { %v422_v23 = vadd.f32 %v2241_v17, %v399_v16  ;;  %v400_v24 = vadd.f32 %v374_v10, %v285_v22  ;;  %471 = vadd.xlane.f32.xlu1 %v452_v19  ;;  %v454_v34 = vmul.f32 %v1896_v29, %v2259_v51 }
 0x115   :  { %v425_v33 = vadd.f32 %v2241_v17, %v402_v21 }
 0x116   :  { %v423_v27 = vadd.f32 %v2241_v17, %v400_v24  ;;  %473 = vadd.xlane.f32.xlu0 %v453_v25  ;;  %1905 = vtanh.f32 %v422_v23 }
 0x117   :  { %v1898_v32 = vpop.eup %1897 }
 0x118   :  { %479 = vadd.xlane.f32.xlu1 %v456_v28  ;;  %1907 = vtanh.f32 %v423_v27  ;;  %v459_v36 = vmul.f32 %v1898_v32, %v2259_v51 }
 0x119   :  { %v1900_v35 = vpop.eup %1899  ;;  %1909 = vtanh.f32 %v424_v30 }
 0x11a   :  { %477 = vadd.xlane.f32.xlu0 %v455_v31  ;;  %v1902_v37 = vpop.eup %1901  ;;  %1911 = vtanh.f32 %v425_v33  ;;  %v460_v38 = vmul.f32 %v1900_v35, %v2259_v51 }
 0x11b   :  { %v1904_v39 = vpop.eup %1903  ;;  %v457_v40 = vmul.f32 %v1902_v37, %v2259_v51 }
 0x11c   :  { %475 = vadd.xlane.f32.xlu1 %v454_v34  ;;  %v458_v17 = vmul.f32 %v1904_v39, %v2259_v51 }
 0x11e   :  { %485 = vadd.xlane.f32.xlu0 %v459_v36 }
 0x120   :  { %487 = vadd.xlane.f32.xlu1 %v460_v38  ;;  %v1906_v41 = vpop.eup %1905 }
 0x121   :  { %v461_v43 = vmul.f32 %v1906_v41, %v2259_v51  ;;  %v2022_v41 = vmov 0  }
 0x122   :  { %481 = vadd.xlane.f32.xlu0 %v457_v40  ;;  %v1908_v42 = vpop.eup %1907  ;;  %1863 = vset.pattern.permute.xlu1 %v2022_v41 }
 0x123   :  { %v1910_v44 = vpop.eup %1909  ;;  %v462_v45 = vmul.f32 %v1908_v42, %v2259_v51  ;;  %1864 = vset.pattern.permute.xlu0 %v2022_v41  ;;  %1337 = vmatprep.mubr.bf16.mxu0 %v2022_v41 }
 0x124   :  { %483 = vadd.xlane.f32.xlu1 %v458_v17  ;;  %v1912_v46 = vpop.eup %1911  ;;  %v463_v47 = vmul.f32 %v1910_v44, %v2259_v51  ;;  %1378 = vmatprep.mubr.bf16.mxu1 %v2022_v41  ;;  %v2379_v17 = vsub.s32 1, %v2231_v63 }
 0x125   :  { %v464_v48 = vmul.f32 %v1912_v46, %v2259_v51  ;;  %v2305_v51 = vsub.s32 %v519_v58, %v2231_v63  ;;  %v635_v58 = vsub.s32 6, %v2231_v63 }
 0x126   :  { %489 = vadd.xlane.f32.xlu0 %v461_v43 }
 0x128   :  { %491 = vadd.xlane.f32.xlu1 %v462_v45  ;;  %v631_v45 = vsub.s32 5, %v2231_v63 }
 0x12a   :  { %493 = vadd.xlane.f32.xlu0 %v463_v47 }
 0x12c   :  { %495 = vadd.xlane.f32.xlu1 %v464_v48  ;;  %v2387_v48 = vsub.s32 2, %v2231_v63 }
 0x19b   :  { %v2287_v49 = vpop.xlane.xlu0 %465 }
 0x19c   :  { %v518_v8 = vrot.slane %v2287_v49, %v2310_v0 }
 0x19d   :  { %v2289_v50 = vpop.xlane.xlu1 %469 }
 0x19e   :  { %v529_v3 = vrot.slane %v2289_v50, %v2310_v0 }
 0x19f   :  { %v2291_v53 = vpop.xlane.xlu0 %467 }
 0x1a0   :  { %v523_v4 = vrot.slane %v2291_v53, %v2305_v51 }
 0x1a1   :  { %v2293_v54 = vpop.xlane.xlu1 %471 }
 0x1a2   :  { %v533_v1 = vrot.slane %v2293_v54, %v2305_v51  ;;  %v525_v12 = vsel %vm524_vm1, %v523_v4, %v518_v8 }
 0x1a3   :  { %v2295_v55 = vpop.xlane.xlu0 %473 }
 0x1a4   :  { %v538_v6 = vrot.slane %v2295_v55, %v2310_v0  ;;  %v534_v9 = vsel %vm524_vm1, %v533_v1, %v529_v3 }
 0x1a5   :  { %v2298_v57 = vpop.xlane.xlu1 %479  ;;  %v590_v15 = vsel %vm589_vm2, %v534_v9, %v525_v12  ;;  %v2405_v9 = vsub.s32 3, %v2231_v63 }
 0x1a6   :  { %v551_v19 = vrot.slane %v2298_v57, %v2305_v51 }
 0x1a7   :  { %v2300_v59 = vpop.xlane.xlu0 %477 }
 0x1a8   :  { %v547_v13 = vrot.slane %v2300_v59, %v2310_v0 }
 0x1a9   :  { %v2302_v60 = vpop.xlane.xlu1 %475 }
 0x1aa   :  { %v542_v61 = vrot.slane %v2302_v60, %v2305_v51  ;;  %v552_v23 = vsel %vm524_vm1, %v551_v19, %v547_v13 }
 0x1ab   :  { %v2307_v62 = vpop.xlane.xlu0 %485 }
 0x1ac   :  { %v543_v10 = vsel %vm524_vm1, %v542_v61, %v538_v6  ;;  %v565_v29 = vrot.slane %v2307_v62, %v2310_v0 }
 0x1ad   :  { %v2316_v2 = vpop.xlane.xlu1 %487  ;;  %v592_v20 = vsel %vm591_vm3, %v543_v10, %v590_v15 }
 0x1ae   :  { %v569_v24 = vrot.slane %v2316_v2, %v2305_v51  ;;  %v594_v28 = vsel %vm593_vm4, %v552_v23, %v592_v20  ;;  %v627_v23 = vsub.s32 4, %v2231_v63 }
 0x1af   :  { %v2324_v7 = vpop.xlane.xlu0 %481 }
 0x1b0   :  { %v556_v16 = vrot.slane %v2324_v7, %v2310_v0  ;;  %v570_v33 = vsel %vm524_vm1, %v569_v24, %v565_v29 }
 0x1b1   :  { %v2330_v11 = vpop.xlane.xlu1 %483 }
 0x1b2   :  { %v560_v14 = vrot.slane %v2330_v11, %v2305_v51 }
 0x1b3   :  { %v2340_v18 = vpop.xlane.xlu0 %489 }
 0x1b4   :  { %v561_v21 = vsel %vm524_vm1, %v560_v14, %v556_v16  ;;  %v574_v26 = vrot.slane %v2340_v18, %v2310_v0 }
 0x1b5   :  { %v2346_v22 = vpop.xlane.xlu1 %491  ;;  %v596_v30 = vsel %vm595_vm5, %v561_v21, %v594_v28 }
 0x1b6   :  { %v578_v25 = vrot.slane %v2346_v22, %v2305_v51  ;;  %v598_v36 = vsel %vm597_vm6, %v570_v33, %v596_v30 }
 0x1b7   :  { %v2355_v27 = vpop.xlane.xlu0 %493 }
 0x1b8   :  { %v579_v32 = vsel %vm524_vm1, %v578_v25, %v574_v26  ;;  %v583_v34 = vrot.slane %v2355_v27, %v2310_v0 }
 0x1b9   :  { %v2361_v31 = vpop.xlane.xlu1 %495  ;;  %v600_v38 = vsel %vm599_vm7, %v579_v32, %v598_v36 }
 0x1ba   :  { %v587_v35 = vrot.slane %v2361_v31, %v2305_v51 }
 0x1bc   :  { %v588_v37 = vsel %vm524_vm1, %v587_v35, %v583_v34 }
 0x1bd   :  { %v602_v39 = vsel %vm601_vm8, %v588_v37, %v600_v38 }
 0x1be   :  { %v605_v40 = vsel %vm604_vm9, %v602_v39, -inf }
 0x1bf   :  { %606 = vmax.xlane.f32.xlu0 %v605_v40 }
 0x24c   :  { %v607_v42 = vpop.xlane.xlu0 %606 }
 0x24d   :  { %v612_v43 = vrot.slane %v607_v42, %v2235_v5  ;;  %v616_v44 = vrot.slane %v607_v42, %v2379_v17  ;;  %v2393_v1 = vrot.slane %v607_v42, %v631_v45  ;;  %v620_v4 = vrot.slane %v607_v42, %v2387_v48 }
 0x24e   :  { %v624_v15 = vrot.slane %v607_v42, %v2405_v9  ;;  %v628_v26 = vrot.slane %v607_v42, %v627_v23 }
 0x24f   :  { %v649_v46 = vsub.f32 %v2287_v49, %v612_v43  ;;  %v650_v47 = vsub.f32 %v2291_v53, %v612_v43  ;;  %v651_v56 = vsub.f32 %v2289_v50, %v616_v44  ;;  %v652_v6 = vsub.f32 %v2293_v54, %v616_v44 }
 0x250   :  { %v639_v53 = vsub.s32 7, %v2231_v63  ;;  %v2400_v50 = vrot.slane %v607_v42, %v635_v58  ;;  %v659_v8 = vsub.f32 %v2307_v62, %v2393_v1  ;;  %v653_v10 = vsub.f32 %v2295_v55, %v620_v4  ;;  %v1187_v63 = vld [vmem:[%s3140_s7 + $0x98] sm:$0xff] }
 0x251   :  { %v665_v61 = vmul.f32 1.442695, %v649_v46  ;;  %v667_v3 = vmul.f32 1.442695, %v650_v47  ;;  %v669_v49 = vmul.f32 1.442695, %v651_v56  ;;  %v654_v16 = vsub.f32 %v2302_v60, %v620_v4 }
 0x252   :  { %v671_v12 = vmul.f32 1.442695, %v652_v6  ;;  %v640_v54 = vrot.slane %v607_v42, %v639_v53  ;;  %v661_v13 = vsub.f32 %v2340_v18, %v2400_v50  ;;  %v685_v14 = vmul.f32 1.442695, %v659_v8 }
 0x253   :  { %1913 = vpow2.f32 %v665_v61  ;;  %v673_v62 = vmul.f32 1.442695, %v653_v10  ;;  %v655_v18 = vsub.f32 %v2300_v59, %v624_v15  ;;  %v675_v24 = vmul.f32 1.442695, %v654_v16 }
 0x254   :  { %1915 = vpow2.f32 %v667_v3  ;;  %v663_v20 = vsub.f32 %v2355_v27, %v640_v54  ;;  %v689_v55 = vmul.f32 1.442695, %v661_v13  ;;  %v656_v27 = vsub.f32 %v2298_v57, %v624_v15 }
 0x255   :  { %1917 = vpow2.f32 %v669_v49  ;;  %v677_v28 = vmul.f32 1.442695, %v655_v18  ;;  %v657_v30 = vsub.f32 %v2324_v7, %v628_v26  ;;  %v658_v34 = vsub.f32 %v2330_v11, %v628_v26 }
 0x256   :  { %1919 = vpow2.f32 %v671_v12  ;;  %v693_v25 = vmul.f32 1.442695, %v663_v20  ;;  %v679_v32 = vmul.f32 1.442695, %v656_v27  ;;  %v660_v37 = vsub.f32 %v2316_v2, %v2393_v1 }
 0x257   :  { %1921 = vpow2.f32 %v685_v14  ;;  %v681_v35 = vmul.f32 1.442695, %v657_v30  ;;  %v683_v38 = vmul.f32 1.442695, %v658_v34  ;;  %v662_v11 = vsub.f32 %v2346_v22, %v2400_v50 }
 0x258   :  { %1923 = vpow2.f32 %v673_v62  ;;  %v687_v40 = vmul.f32 1.442695, %v660_v37  ;;  %v664_v43 = vsub.f32 %v2361_v31, %v640_v54 }
 0x259   :  { %1925 = vpow2.f32 %v689_v55  ;;  %v691_v2 = vmul.f32 1.442695, %v662_v11 }
 0x25a   :  { %1927 = vpow2.f32 %v675_v24  ;;  %v695_v46 = vmul.f32 1.442695, %v664_v43 }
 0x25b   :  { %1929 = vpow2.f32 %v693_v25 }
 0x25c   :  { %1931 = vpow2.f32 %v677_v28 }
 0x25d   :  { %v2414_v19 = vpop.eup %1913  ;;  %1933 = vpow2.f32 %v679_v32 }
 0x25e   :  { %v2417_v21 = vpop.eup %1915  ;;  %714 = vperm.xlu1 %1863, %v2414_v19   ;;  %1935 = vpow2.f32 %v681_v35 }
 0x25f   :  { %717 = vperm.xlu0 %1864, %v2417_v21   ;;  %v2423_v60 = vpop.eup %1917  ;;  %1937 = vpow2.f32 %v683_v38 }
 0x260   :  { %v2429_v29 = vpop.eup %1919  ;;  %1939 = vpow2.f32 %v687_v40 }
 0x261   :  { %v2432_v59 = vpop.eup %1921  ;;  %1941 = vpow2.f32 %v691_v2 }
 0x262   :  { %720 = vperm.xlu1 %1863, %v2423_v60   ;;  %v2436_v33 = vpop.eup %1923  ;;  %1943 = vpow2.f32 %v695_v46 }
 0x263   :  { %744 = vperm.xlu0 %1864, %v2432_v59   ;;  %v2439_v57 = vpop.eup %1925 }
 0x264   :  { %v2443_v36 = vpop.eup %1927 }
 0x265   :  { %v2446_v7 = vpop.eup %1929 }
 0x266   :  { %723 = vperm.xlu1 %1863, %v2429_v29   ;;  %v2451_v39 = vpop.eup %1931 }
 0x267   :  { %750 = vperm.xlu0 %1864, %v2439_v57   ;;  %v2456_v42 = vpop.eup %1933 }
 0x268   :  { %v2460_v44 = vpop.eup %1935 }
 0x269   :  { %v2463_v47 = vpop.eup %1937 }
 0x26a   :  { %726 = vperm.xlu1 %1863, %v2436_v33   ;;  %v2466_v22 = vpop.eup %1939 }
 0x26b   :  { %756 = vperm.xlu0 %1864, %v2446_v7   ;;  %v2469_v56 = vpop.eup %1941 }
 0x26c   :  { %v2472_v31 = vpop.eup %1943 }
 0x26e   :  { %729 = vperm.xlu1 %1863, %v2443_v36  }
 0x272   :  { %732 = vperm.xlu1 %1863, %v2451_v39  }
 0x276   :  { %735 = vperm.xlu1 %1863, %v2456_v42  }
 0x27a   :  { %738 = vperm.xlu1 %1863, %v2460_v44  }
 0x27e   :  { %741 = vperm.xlu1 %1863, %v2463_v47  }
 0x282   :  { %747 = vperm.xlu1 %1863, %v2466_v22  }
 0x286   :  { %753 = vperm.xlu1 %1863, %v2469_v56  }
 0x28a   :  { %759 = vperm.xlu1 %1863, %v2472_v31  }
 0x2dd   :  { %v715_v1 = vpop.permute.xlu1 %714 }
 0x2de   :  { %v718_v50 = vpop.permute.xlu0 %717  ;;  %v764_v20 = vrot.slane %v715_v1, %v2310_v0 }
 0x2df   :  { %v768_v62 = vrot.slane %v718_v50, %v2305_v51 }
 0x2e1   :  { %v721_v61 = vpop.permute.xlu1 %720  ;;  %v769_v35 = vsel %vm524_vm1, %v768_v62, %v764_v20 }
 0x2e2   :  { %v745_v12 = vpop.permute.xlu0 %744  ;;  %v773_v55 = vrot.slane %v721_v61, %v2310_v0 }
 0x2e3   :  { %v809_v37 = vrot.slane %v745_v12, %v2310_v0 }
 0x2e5   :  { %v724_v3 = vpop.permute.xlu1 %723 }
 0x2e6   :  { %v777_v13 = vrot.slane %v724_v3, %v2305_v51  ;;  %v751_v14 = vpop.permute.xlu0 %750 }
 0x2e7   :  { %v818_v40 = vrot.slane %v751_v14, %v2310_v0 }
 0x2e8   :  { %v778_v26 = vsel %vm524_vm1, %v777_v13, %v773_v55 }
 0x2e9   :  { %v727_v4 = vpop.permute.xlu1 %726  ;;  %v833_v43 = vsel %vm589_vm2, %v778_v26, %v769_v35  ;;  %v1186_v35 = vld [vmem:[%s3140_s7 + $0x90] sm:$0xff] }
 0x2ea   :  { %v782_v24 = vrot.slane %v727_v4, %v2310_v0  ;;  %v757_v2 = vpop.permute.xlu0 %756 }
 0x2ed   :  { %v730_v6 = vpop.permute.xlu1 %729 }
 0x2ee   :  { %v786_v15 = vrot.slane %v730_v6, %v2305_v51 }
 0x2f0   :  { %v787_v30 = vsel %vm524_vm1, %v786_v15, %v782_v24 }
 0x2f1   :  { %v733_v49 = vpop.permute.xlu1 %732  ;;  %v834_v1 = vsel %vm591_vm3, %v787_v30, %v833_v43  ;;  %v1195_v43 = vld [vmem:[%s3140_s7 + $0xd8] sm:$0xff] }
 0x2f2   :  { %v791_v27 = vrot.slane %v733_v49, %v2310_v0  ;;  %v827_v49 = vrot.slane %v757_v2, %v2310_v0 }
 0x2f5   :  { %v736_v8 = vpop.permute.xlu1 %735 }
 0x2f6   :  { %v795_v18 = vrot.slane %v736_v8, %v2305_v51 }
 0x2f8   :  { %v796_v38 = vsel %vm524_vm1, %v795_v18, %v791_v27 }
 0x2f9   :  { %v739_v10 = vpop.permute.xlu1 %738  ;;  %v835_v3 = vsel %vm593_vm4, %v796_v38, %v834_v1  ;;  %v1192_v1 = vld [vmem:[%s3140_s7 + $0xc0] sm:$0xff] }
 0x2fa   :  { %v800_v32 = vrot.slane %v739_v10, %v2310_v0 }
 0x2fd   :  { %v742_v54 = vpop.permute.xlu1 %741 }
 0x2fe   :  { %v804_v25 = vrot.slane %v742_v54, %v2305_v51 }
 0x300   :  { %v805_v46 = vsel %vm524_vm1, %v804_v25, %v800_v32 }
 0x301   :  { %v748_v16 = vpop.permute.xlu1 %747  ;;  %v836_v50 = vsel %vm595_vm5, %v805_v46, %v835_v3  ;;  %v1199_v46 = vld [vmem:[%s3140_s7 + $0xf8] sm:$0xff] }
 0x302   :  { %v813_v28 = vrot.slane %v748_v16, %v2305_v51  ;;  %v1255_v3 = vpack.c.bf16 %v1199_v46, %v1195_v43  ;;  %v1230_v43 = vld [vmem:[%s3140_s7 + $0x1f0] sm:$0xff]  ;;  %v1237_v46 = vld [vmem:[%s3140_s7 + $0x228] sm:$0xff] }
 0x304   :  { %v814_v61 = vsel %vm524_vm1, %v813_v28, %v809_v37  ;;  %v1190_v37 = vld [vmem:[%s3140_s7 + $0xb0] sm:$0xff] }
 0x305   :  { %v754_v34 = vpop.permute.xlu1 %753  ;;  %v837_v10 = vsel %vm597_vm6, %v814_v61, %v836_v50  ;;  %v1250_v38 = vpack.c.bf16 %v1190_v37, %v1186_v35  ;;  %v1196_v61 = vld [vmem:[%s3140_s7 + $0xe0] sm:$0xff] }
 0x306   :  { %v822_v11 = vrot.slane %v754_v34, %v2305_v51  ;;  %v1224_v37 = vld [vmem:[%s3140_s7 + $0x1c0] sm:$0xff] }
 0x308   :  { %v823_v4 = vsel %vm524_vm1, %v822_v11, %v818_v40  ;;  %v1193_v11 = vld [vmem:[%s3140_s7 + $0xc8] sm:$0xff] }
 0x309   :  { %v760_v6 = vpop.permute.xlu1 %759  ;;  %v838_v54 = vsel %vm599_vm7, %v823_v4, %v837_v10  ;;  %v1197_v40 = vld [vmem:[%s3140_s7 + $0xe8] sm:$0xff]  ;;  %v1252_v4 = vpack.c.bf16 %v1196_v61, %v1192_v1 }
 0x30a   :  { %v831_v8 = vrot.slane %v760_v6, %v2305_v51  ;;  %v1253_v2 = vpack.c.bf16 %v1197_v40, %v1193_v11  ;;  %v1194_v6 = vld [vmem:[%s3140_s7 + $0xd0] sm:$0xff]  ;;  %v1205_v10 = vld [vmem:[%s3140_s7 + $0x128] sm:$0xff] }
 0x30b   :  { %v1226_v11 = vld [vmem:[%s3140_s7 + $0x1d0] sm:$0xff] }
 0x30c   :  { %v832_v12 = vsel %vm524_vm1, %v831_v8, %v827_v49  ;;  %v1198_v49 = vld [vmem:[%s3140_s7 + $0xf0] sm:$0xff]  ;;  %v1201_v8 = vld [vmem:[%s3140_s7 + $0x108] sm:$0xff]  ;;  %v1270_v1 = vpack.c.bf16 %v1230_v43, %v1226_v11 }
 0x30d   :  { %v839_v13 = vsel %vm601_vm8, %v832_v12, %v838_v54  ;;  %v1254_v50 = vpack.c.bf16 %v1198_v49, %v1194_v6  ;;  %v1203_v12 = vld [vmem:[%s3140_s7 + $0x118] sm:$0xff]  ;;  %v1257_v54 = vpack.c.bf16 %v1205_v10, %v1201_v8  ;;  %v1232_v6 = vld [vmem:[%s3140_s7 + $0x200] sm:$0xff]  ;;  %v1234_v8 = vld [vmem:[%s3140_s7 + $0x210] sm:$0xff] }
 0x30e   :  { %v841_v14 = vsel %vm604_vm9, %v839_v13, 0.0  ;;  %v1207_v13 = vld [vmem:[%s3140_s7 + $0x138] sm:$0xff]  ;;  %v1238_v10 = vld [vmem:[%s3140_s7 + $0x230] sm:$0xff] }
 0x30f   :  { %842 = vadd.xlane.f32.xlu0 %v841_v14  ;;  %v1200_v14 = vld [vmem:[%s3140_s7 + $0x100] sm:$0xff] }
 0x39c   :  { %v843_v15 = vpop.xlane.xlu0 %842 }
 0x39d   :  { %1945 = vrcp.f32 %v843_v15  ;;  %v1204_v15 = vld [vmem:[%s3140_s7 + $0x120] sm:$0xff] }
 0x3a7   :  { %v1946_v16 = vpop.eup %1945 }
 0x3a8   :  { %v865_v62 = vrot.slane %v1946_v16, %v627_v23  ;;  %v849_v20 = vrot.slane %v1946_v16, %v2235_v5  ;;  %v877_v24 = vrot.slane %v1946_v16, %v639_v53  ;;  %v853_v27 = vrot.slane %v1946_v16, %v2379_v17 }
 0x3a9   :  { %v873_v32 = vrot.slane %v1946_v16, %v635_v58 }
 0x3aa   :  { %v894_v55 = vmul.f32 %v2460_v44, %v865_v62  ;;  %v886_v18 = vmul.f32 %v2414_v19, %v849_v20  ;;  %v900_v25 = vmul.f32 %v2446_v7, %v877_v24  ;;  %v887_v26 = vmul.f32 %v2417_v21, %v849_v20  ;;  %v1202_v20 = vld [vmem:[%s3140_s7 + $0x110] sm:$0xff] }
 0x3ab   :  { %v888_v23 = vmul.f32 %v2423_v60, %v853_v27  ;;  %v889_v44 = vmul.f32 %v2429_v29, %v853_v27  ;;  %v857_v19 = vrot.slane %v1946_v16, %v2387_v48  ;;  %v861_v7 = vrot.slane %v1946_v16, %v2405_v9 }
 0x3ac   :  { %943 = vperm.xlu0 %1864, %v894_v55   ;;  %919 = vperm.xlu1 %1863, %v886_v18   ;;  %v895_v60 = vmul.f32 %v2463_v47, %v865_v62  ;;  %v869_v29 = vrot.slane %v1946_v16, %v631_v45  ;;  %v901_v47 = vmul.f32 %v2472_v31, %v877_v24  ;;  %v1185_v45 = vld [vmem:[%s3140_s7 + $0x88] sm:$0xff]  ;;  %v1206_v55 = vld [vmem:[%s3140_s7 + $0x130] sm:$0xff] }
 0x3ad   :  { %v890_v53 = vmul.f32 %v2436_v33, %v857_v19  ;;  %v891_v28 = vmul.f32 %v2443_v36, %v857_v19  ;;  %v892_v21 = vmul.f32 %v2451_v39, %v861_v7  ;;  %v893_v30 = vmul.f32 %v2456_v42, %v861_v7  ;;  %v1209_v24 = vld [vmem:[%s3140_s7 + $0x148] sm:$0xff]  ;;  %v1212_v19 = vld [vmem:[%s3140_s7 + $0x160] sm:$0xff]  ;;  %v1210_v7 = vld [vmem:[%s3140_s7 + $0x150] sm:$0xff] }
 0x3ae   :  { %v896_v33 = vmul.f32 %v2432_v59, %v869_v29  ;;  %v897_v36 = vmul.f32 %v2466_v22, %v869_v29  ;;  %v898_v39 = vmul.f32 %v2439_v57, %v873_v32  ;;  %v899_v42 = vmul.f32 %v2469_v56, %v873_v32  ;;  %v1189_v59 = vld [vmem:[%s3140_s7 + $0xa8] sm:$0xff]  ;;  %v1191_v57 = vld [vmem:[%s3140_s7 + $0xb8] sm:$0xff]  ;;  %v1184_v22 = vld [vmem:[%s3140_s7 + $0x80] sm:$0xff] }
 0x3af   :  { %v1249_v58 = vpack.c.bf16 %v1189_v59, %v1185_v45  ;;  %v1188_v56 = vld [vmem:[%s3140_s7 + $0xa0] sm:$0xff]  ;;  %v1251_v31 = vpack.c.bf16 %v1191_v57, %v1187_v63  ;;  %v1259_v16 = vpack.c.bf16 %v1207_v13, %v1203_v12  ;;  %v1256_v62 = vpack.c.bf16 %v1204_v15, %v1200_v14  ;;  %v1221_v29 = vld [vmem:[%s3140_s7 + $0x1a8] sm:$0xff]  ;;  %v1223_v32 = vld [vmem:[%s3140_s7 + $0x1b8] sm:$0xff] }
 0x3b0   :  { %961 = vperm.xlu0 %1864, %v900_v25   ;;  %922 = vperm.xlu1 %1863, %v887_v26   ;;  %v1248_v34 = vpack.c.bf16 %v1188_v56, %v1184_v22  ;;  %v1258_v18 = vpack.c.bf16 %v1206_v55, %v1202_v20  ;;  %v1213_v25 = vld [vmem:[%s3140_s7 + $0x168] sm:$0xff]  ;;  %v1211_v26 = vld [vmem:[%s3140_s7 + $0x158] sm:$0xff]  ;;  %v1218_v59 = vld [vmem:[%s3140_s7 + $0x190] sm:$0xff]  ;;  %v1274_v15 = vpack.c.bf16 %v1238_v10, %v1234_v8 }
 0x3b1   :  { %1305 = vmatprep.subr.bf16.mxu0 %v1249_v58  ;;  %1346 = vmatprep.subr.bf16.mxu1 %v1251_v31  ;;  %v1261_v27 = vpack.c.bf16 %v1213_v25, %v1209_v24  ;;  %v1222_v63 = vld [vmem:[%s3140_s7 + $0x1b0] sm:$0xff]  ;;  %v1225_v58 = vld [vmem:[%s3140_s7 + $0x1c8] sm:$0xff]  ;;  %v1227_v56 = vld [vmem:[%s3140_s7 + $0x1d8] sm:$0xff] }
 0x3b2   :  { %1306 = vmatpush1.bf16.msra.mxu0 %v1248_v34  ;;  %1347 = vmatpush1.bf16.msra.mxu1 %v1250_v38  ;;  %v1266_v57 = vpack.c.bf16 %v1222_v63, %v1218_v59  ;;  %v1229_v22 = vld [vmem:[%s3140_s7 + $0x1e8] sm:$0xff]  ;;  %v1231_v31 = vld [vmem:[%s3140_s7 + $0x1f8] sm:$0xff]  ;;  %v1228_v38 = vld [vmem:[%s3140_s7 + $0x1e0] sm:$0xff] }
 0x3b3   :  { %1307 = vmatprep.subr.bf16.mxu0 %v1253_v2  ;;  %1348 = vmatprep.subr.bf16.mxu1 %v1255_v3  ;;  %v1269_v34 = vpack.c.bf16 %v1229_v22, %v1225_v58  ;;  %v1271_v35 = vpack.c.bf16 %v1231_v31, %v1227_v56  ;;  %v1268_v40 = vpack.c.bf16 %v1228_v38, %v1224_v37  ;;  %v1233_v2 = vld [vmem:[%s3140_s7 + $0x208] sm:$0xff]  ;;  %v1235_v3 = vld [vmem:[%s3140_s7 + $0x218] sm:$0xff]  ;;  %v1240_v20 = vld [vmem:[%s3140_s7 + $0x240] sm:$0xff] }
 0x3b4   :  { %925 = vperm.xlu1 %1863, %v888_v23   ;;  %v1215_v23 = vld [vmem:[%s3140_s7 + $0x178] sm:$0xff]  ;;  %v1273_v61 = vpack.c.bf16 %v1237_v46, %v1233_v2  ;;  %v1245_v13 = vld [vmem:[%s3140_s7 + $0x268] sm:$0xff]  ;;  %v1244_v55 = vld [vmem:[%s3140_s7 + $0x260] sm:$0xff] }
 0x3b5   :  { %v1243_v14 = vld [vmem:[%s3140_s7 + $0x258] sm:$0xff]  ;;  %v1242_v24 = vld [vmem:[%s3140_s7 + $0x250] sm:$0xff] }
 0x3b6   :  { %1308 = vmatpush1.bf16.msra.mxu0 %v1252_v4  ;;  %1349 = vmatpush1.bf16.msra.mxu1 %v1254_v50  ;;  %v1239_v4 = vld [vmem:[%s3140_s7 + $0x238] sm:$0xff]  ;;  %v1236_v50 = vld [vmem:[%s3140_s7 + $0x220] sm:$0xff]  ;;  %v1246_v25 = vld [vmem:[%s3140_s7 + $0x270] sm:$0xff] }
 0x3b7   :  { %1309 = vmatprep.subr.bf16.mxu0 %v1257_v54  ;;  %1350 = vmatprep.subr.bf16.mxu1 %v1259_v16  ;;  %v1275_v49 = vpack.c.bf16 %v1239_v4, %v1235_v3  ;;  %v1272_v12 = vpack.c.bf16 %v1236_v50, %v1232_v6  ;;  %v1241_v54 = vld [vmem:[%s3140_s7 + $0x248] sm:$0xff]  ;;  %v1965_v59 = vld [vmem:[%s3136_s3 + $0x10] sm:$0xff]   ;;  %v1966_v31 = vld [vmem:[%s3136_s3 + $0x18] sm:$0xff]  }
 0x3b8   :  { %928 = vperm.xlu1 %1863, %v889_v44   ;;  %v1208_v44 = vld [vmem:[%s3140_s7 + $0x140] sm:$0xff]  ;;  %v1277_v16 = vpack.c.bf16 %v1245_v13, %v1241_v54  ;;  %v1052_v63 = vunpack.c.h.bf16 %v1965_v59  ;;  %v1051_v56 = vunpack.c.l.bf16 %v1965_v59  ;;  %v1053_v37 = vunpack.c.l.bf16 %v1966_v31 }
 0x3ba   :  { %1310 = vmatpush1.bf16.msra.mxu0 %v1256_v62  ;;  %1351 = vmatpush1.bf16.msra.mxu1 %v1258_v18  ;;  %v1247_v62 = vld [vmem:[%s3140_s7 + $0x278] sm:$0xff] }
 0x3bb   :  { %1311 = vmatprep.subr.bf16.mxu0 %v1261_v27  ;;  %v1279_v18 = vpack.c.bf16 %v1247_v62, %v1243_v14  ;;  %v1157_v27 = vld [vmem:[%s3140_s7 + $0x28] sm:$0xff] }
 0x3bc   :  { %931 = vperm.xlu1 %1863, %v890_v53   ;;  %v1263_v53 = vpack.c.bf16 %v1215_v23, %v1211_v26  ;;  %v1153_v26 = vld [vmem:[%s3140_s7 + $0x8] sm:$0xff]  ;;  %v1155_v23 = vld [vmem:[%s3140_s7 + $0x18] sm:$0xff] }
 0x3be   :  { %1352 = vmatprep.subr.bf16.mxu1 %v1263_v53  ;;  %v1278_v53 = vpack.c.bf16 %v1246_v25, %v1242_v24  ;;  %v1968_v24 = vld [vmem:[%s3136_s3 + $0x28] sm:$0xff]  }
 0x3bf   :  { %v1057_v25 = vunpack.c.l.bf16 %v1968_v24 }
 0x3c0   :  { %934 = vperm.xlu1 %1863, %v891_v28   ;;  %v1260_v28 = vpack.c.bf16 %v1212_v19, %v1208_v44  ;;  %v1159_v44 = vld [vmem:[%s3140_s7 + $0x38] sm:$0xff]  ;;  %v1276_v19 = vpack.c.bf16 %v1244_v55, %v1240_v20 }
 0x3c2   :  { %1312 = vmatpush1.bf16.msra.mxu0 %v1260_v28  ;;  %v1169_v28 = vpack.c.bf16 %v1157_v27, %v1153_v26  ;;  %v1058_v26 = vunpack.c.h.bf16 %v1968_v24  ;;  %v2789_v27 = vld [vmem:[%s3136_s3 + $0x38] sm:$0xff]  }
 0x3c4   :  { %937 = vperm.xlu1 %1863, %v892_v21   ;;  %v1214_v21 = vld [vmem:[%s3140_s7 + $0x170] sm:$0xff] }
 0x3c8   :  { %940 = vperm.xlu1 %1863, %v893_v30   ;;  %v1262_v30 = vpack.c.bf16 %v1214_v21, %v1210_v7  ;;  %v1171_v7 = vpack.c.bf16 %v1159_v44, %v1155_v23  ;;  %v1061_v23 = vunpack.c.l.bf16 %v2789_v27 }
 0x3ca   :  { %1353 = vmatpush1.bf16.msra.mxu1 %v1262_v30 }
 0x3cc   :  { %946 = vperm.xlu1 %1863, %v895_v60   ;;  %v1217_v60 = vld [vmem:[%s3140_s7 + $0x188] sm:$0xff] }
 0x3d0   :  { %949 = vperm.xlu1 %1863, %v896_v33   ;;  %v1219_v33 = vld [vmem:[%s3140_s7 + $0x198] sm:$0xff] }
 0x3d4   :  { %952 = vperm.xlu1 %1863, %v897_v36   ;;  %v1265_v36 = vpack.c.bf16 %v1221_v29, %v1217_v60 }
 0x3d6   :  { %1313 = vmatprep.subr.bf16.mxu0 %v1265_v36 }
 0x3d8   :  { %955 = vperm.xlu1 %1863, %v898_v39   ;;  %v1216_v39 = vld [vmem:[%s3140_s7 + $0x180] sm:$0xff] }
 0x3dc   :  { %958 = vperm.xlu1 %1863, %v899_v42   ;;  %v1220_v42 = vld [vmem:[%s3140_s7 + $0x1a0] sm:$0xff] }
 0x3dd   :  { %v1264_v45 = vpack.c.bf16 %v1220_v42, %v1216_v39  ;;  %v1964_v42 = vld [vmem:[%s3136_s3 + $0x8] sm:$0xff]  }
 0x3de   :  { %v1049_v58 = vunpack.c.l.bf16 %v1964_v42 }
 0x3df   :  { %1314 = vmatpush1.bf16.msra.mxu0 %v1264_v45 }
 0x3e0   :  { %964 = vperm.xlu1 %1863, %v901_v47   ;;  %v1267_v47 = vpack.c.bf16 %v1223_v32, %v1219_v33  ;;  %1315 = vmatprep.subr.bf16.mxu0 %v1269_v34  ;;  %v1963_v32 = vld [vmem:[%s3136_s3] sm:$0xff]   ;;  %v1054_v34 = vunpack.c.h.bf16 %v1966_v31 }
 0x3e1   :  { %v1048_v39 = vunpack.c.h.bf16 %v1963_v32  ;;  %v1047_v45 = vunpack.c.l.bf16 %v1963_v32  ;;  %v1970_v32 = vld [vmem:[%s3136_s3 + $0x30] sm:$0xff]  }
 0x3e2   :  { %1354 = vmatprep.subr.bf16.mxu1 %v1267_v47  ;;  %v1050_v47 = vunpack.c.h.bf16 %v1964_v42  ;;  %v1060_v42 = vunpack.c.h.bf16 %v1970_v32 }
 0x3e3   :  { %1355 = vmatpush1.bf16.msra.mxu1 %v1266_v57  ;;  %1316 = vmatpush1.bf16.msra.mxu0 %v1268_v40 }
 0x3e4   :  { %1356 = vmatprep.subr.bf16.mxu1 %v1271_v35  ;;  %1317 = vmatprep.subr.bf16.mxu0 %v1273_v61  ;;  %v1967_v61 = vld [vmem:[%s3136_s3 + $0x20] sm:$0xff]  }
 0x3e5   :  { %v1055_v3 = vunpack.c.l.bf16 %v1967_v61 }
 0x3e7   :  { %1357 = vmatpush1.bf16.msra.mxu1 %v1270_v1  ;;  %1318 = vmatpush1.bf16.msra.mxu0 %v1272_v12 }
 0x3e8   :  { %1358 = vmatprep.subr.bf16.mxu1 %v1275_v49  ;;  %1319 = vmatprep.subr.bf16.mxu0 %v1277_v16  ;;  %v1056_v49 = vunpack.c.h.bf16 %v1967_v61 }
 0x3eb   :  { %1359 = vmatpush1.bf16.msra.mxu1 %v1274_v15  ;;  %1320 = vmatpush1.bf16.msra.mxu0 %v1276_v19 }
 0x3ec   :  { %1360 = vmatprep.subr.bf16.mxu1 %v1279_v18  ;;  %1391 = vmatprep.subr.bf16.mxu0 %v1169_v28 }
 0x3ef   :  { %1361 = vmatpush1.bf16.msra.mxu1 %v1278_v53 }
 0x3f0   :  { %1432 = vmatprep.subr.bf16.mxu1 %v1171_v7 }
 0x42b   :  { %v2739_v21 = vpop.permute.xlu1 %919  ;;  %v2778_v50 = vpop.permute.xlu0 %943 }
 0x42c   :  { %v1079_v38 = vmul.f32 %v1047_v45, %v2739_v21  ;;  %v1087_v13 = vmul.f32 %v1055_v3, %v2778_v50  ;;  %v1005_v45 = vrot.slane %v2778_v50, %v2310_v0 }
 0x42f   :  { %v2741_v30 = vpop.permute.xlu1 %922  ;;  %v2794_v28 = vpop.permute.xlu0 %961 }
 0x430   :  { %v1080_v22 = vmul.f32 %v1048_v39, %v2741_v30  ;;  %v1059_v39 = vunpack.c.l.bf16 %v1970_v32  ;;  %v973_v59 = vrot.slane %v2741_v30, %v2305_v51 }
 0x432   :  { %v1095_v2 = vadd.f32 %v1080_v22, %v1079_v38  ;;  %v969_v22 = vrot.slane %v2739_v21, %v2310_v0  ;;  %v1093_v21 = vmul.f32 %v1061_v23, %v2794_v28 }
 0x433   :  { %v2743_v60 = vpop.permute.xlu1 %925 }
 0x434   :  { %v1081_v40 = vmul.f32 %v1049_v58, %v2743_v60  ;;  %v1096_v54 = vrot.slane %v1095_v2, 4 }
 0x436   :  { %v1097_v18 = vadd.f32 %v1096_v54, %v1095_v2 }
 0x437   :  { %v2745_v29 = vpop.permute.xlu1 %928 }
 0x438   :  { %v1082_v35 = vmul.f32 %v1050_v47, %v2745_v29  ;;  %v982_v44 = vrot.slane %v2745_v29, %v2305_v51  ;;  %v1062_v47 = vunpack.c.h.bf16 %v2789_v27  ;;  %v978_v29 = vrot.slane %v2743_v60, %v2310_v0 }
 0x43a   :  { %v1102_v4 = vadd.f32 %v1082_v35, %v1081_v40  ;;  %v1032_v35 = vrot.slane %v2794_v28, %v2310_v0 }
 0x43b   :  { %v2747_v33 = vpop.permute.xlu1 %931 }
 0x43c   :  { %v1083_v46 = vmul.f32 %v1051_v56, %v2747_v33  ;;  %v1103_v14 = vrot.slane %v1102_v4, 4  ;;  %v1098_v56 = vrot.slane %v1097_v18, 2 }
 0x43e   :  { %v1104_v19 = vadd.f32 %v1103_v14, %v1102_v4  ;;  %v1099_v4 = vadd.f32 %v1098_v56, %v1097_v18 }
 0x43f   :  { %v2749_v36 = vpop.permute.xlu1 %934 }
 0x440   :  { %v1084_v11 = vmul.f32 %v1052_v63, %v2749_v36  ;;  %v1105_v38 = vrot.slane %v1104_v19, 2  ;;  %v991_v30 = vrot.slane %v2749_v36, %v2305_v51 }
 0x442   :  { %v1109_v8 = vadd.f32 %v1084_v11, %v1083_v46  ;;  %v974_v46 = vsel %vm524_vm1, %v973_v59, %v969_v22 }
 0x443   :  { %v2760_v57 = vpop.permute.xlu1 %937 }
 0x444   :  { %v1085_v6 = vmul.f32 %v1053_v37, %v2760_v57  ;;  %v1110_v16 = vrot.slane %v1109_v8, 4  ;;  %v983_v37 = vsel %vm524_vm1, %v982_v44, %v978_v29  ;;  %v996_v36 = vrot.slane %v2760_v57, %v2310_v0 }
 0x445   :  { %v1038_v50 = vsel %vm589_vm2, %v983_v37, %v974_v46 }
 0x446   :  { %v1111_v7 = vadd.f32 %v1110_v16, %v1109_v8 }
 0x447   :  { %v2770_v43 = vpop.permute.xlu1 %940 }
 0x448   :  { %v1086_v1 = vmul.f32 %v1054_v34, %v2770_v43  ;;  %v1112_v60 = vrot.slane %v1111_v7, 2  ;;  %v1000_v40 = vrot.slane %v2770_v43, %v2305_v51  ;;  %v1106_v43 = vadd.f32 %v1105_v38, %v1104_v19 }
 0x44a   :  { %v1116_v10 = vadd.f32 %v1086_v1, %v1085_v6  ;;  %v987_v6 = vrot.slane %v2747_v33, %v2310_v0 }
 0x44b   :  { %v947_v12 = vpop.permute.xlu1 %946 }
 0x44c   :  { %v1088_v15 = vmul.f32 %v1056_v49, %v947_v12  ;;  %v1117_v62 = vrot.slane %v1116_v10, 4  ;;  %v1009_v61 = vrot.slane %v947_v12, %v2305_v51  ;;  %v992_v54 = vsel %vm524_vm1, %v991_v30, %v987_v6 }
 0x44d   :  { %v1001_v12 = vsel %vm524_vm1, %v1000_v40, %v996_v36  ;;  %v1039_v27 = vsel %vm591_vm3, %v992_v54, %v1038_v50 }
 0x44e   :  { %v1123_v20 = vadd.f32 %v1088_v15, %v1087_v13  ;;  %v1118_v63 = vadd.f32 %v1117_v62, %v1116_v10  ;;  %v1113_v13 = vadd.f32 %v1112_v60, %v1111_v7  ;;  %v1010_v16 = vsel %vm524_vm1, %v1009_v61, %v1005_v45 }
 0x44f   :  { %v2781_v55 = vpop.permute.xlu1 %949  ;;  %v1040_v19 = vsel %vm593_vm4, %v1001_v12, %v1039_v27  ;;  %v1100_v7 = vrot.slane %v1099_v4, 1  ;;  %v1156_v27 = vld [vmem:[%s3140_s7 + $0x20] sm:$0xff] }
 0x450   :  { %v1124_v53 = vrot.slane %v1123_v20, 4  ;;  %v1089_v31 = vmul.f32 %v1057_v25, %v2781_v55  ;;  %v1119_v1 = vrot.slane %v1118_v63, 2  ;;  %v1014_v33 = vrot.slane %v2781_v55, %v2310_v0 }
 0x451   :  { %v1101_v60 = vadd.f32 %v1100_v7, %v1099_v4  ;;  %v1165_v7 = vld [vmem:[%s3140_s7 + $0x68] sm:$0xff] }
 0x452   :  { %v1125_v11 = vadd.f32 %v1124_v53, %v1123_v20  ;;  %v1120_v15 = vadd.f32 %v1119_v1, %v1118_v63 }
 0x453   :  { %v953_v58 = vpop.permute.xlu1 %952  ;;  %v1176_v36 = vpack.c.bf16 %v1101_v60, %v1101_v60 }
 0x454   :  { %v1090_v34 = vmul.f32 %v1058_v26, %v953_v58  ;;  %v1126_v8 = vrot.slane %v1125_v11, 2  ;;  %v1018_v10 = vrot.slane %v953_v58, %v2305_v51  ;;  %v1107_v26 = vrot.slane %v1106_v43, 1 }
 0x455   :  { %v1121_v32 = vrot.slane %v1120_v15, 1 }
 0x456   :  { %v1130_v2 = vadd.f32 %v1090_v34, %v1089_v31  ;;  %v1127_v23 = vadd.f32 %v1126_v8, %v1125_v11  ;;  %v1019_v44 = vsel %vm524_vm1, %v1018_v10, %v1014_v33  ;;  %v1108_v58 = vadd.f32 %v1107_v26, %v1106_v43  ;;  %v1152_v26 = vld [vmem:[%s3140_s7] sm:$0xff] }
 0x457   :  { %v956_v3 = vpop.permute.xlu1 %955  ;;  %v1122_v40 = vadd.f32 %v1121_v32, %v1120_v15  ;;  %v1167_v32 = vld [vmem:[%s3140_s7 + $0x78] sm:$0xff] }
 0x458   :  { %v1131_v49 = vrot.slane %v1130_v2, 4  ;;  %v1023_v57 = vrot.slane %v956_v3, %v2310_v0  ;;  %v1091_v18 = vmul.f32 %v1059_v39, %v956_v3  ;;  %v1114_v0 = vrot.slane %v1113_v13, 1 }
 0x459   :  { %v1041_v39 = vsel %vm595_vm5, %v1010_v16, %v1040_v19  ;;  %v1128_v22 = vrot.slane %v1127_v23, 1  ;;  %v1158_v19 = vld [vmem:[%s3140_s7 + $0x30] sm:$0xff] }
 0x45a   :  { %v1132_v14 = vadd.f32 %v1131_v49, %v1130_v2  ;;  %v1042_v63 = vsel %vm597_vm6, %v1019_v44, %v1041_v39  ;;  %v1115_v11 = vadd.f32 %v1114_v0, %v1113_v13  ;;  %v1179_v49 = vpack.c.bf16 %v1122_v40, %v1122_v40  ;;  %v1154_v44 = vld [vmem:[%s3140_s7 + $0x10] sm:$0xff]  ;;  %v1163_v0 = vld [vmem:[%s3140_s7 + $0x58] sm:$0xff] }
 0x45b   :  { %v959_v62 = vpop.permute.xlu1 %958  ;;  %v1288_v13 = vunpack.c.l.b16 %v1176_v36  ;;  %v1486_v36 = vld [vmem:[%s3142_s9 + $0x68] sm:$0xff] }
 0x45c   :  { %v1133_v20 = vrot.slane %v1132_v14, 2  ;;  %v1027_v24 = vrot.slane %v959_v62, %v2305_v51  ;;  %v1092_v25 = vmul.f32 %v1060_v42, %v959_v62  ;;  %v1178_v6 = vpack.c.bf16 %v1115_v11, %v1115_v11  ;;  %v1476_v11 = vld [vmem:[%s3142_s9 + $0x18] sm:$0xff] }
 0x45d   :  { %v1291_v12 = vunpack.c.l.b16 %v1179_v49  ;;  %v1484_v49 = vld [vmem:[%s3142_s9 + $0x58] sm:$0xff] }
 0x45e   :  { %v1134_v53 = vadd.f32 %v1133_v20, %v1132_v14  ;;  %v1028_v28 = vsel %vm524_vm1, %v1027_v24, %v1023_v57  ;;  %v1137_v55 = vadd.f32 %v1092_v25, %v1091_v18  ;;  %v1290_v54 = vunpack.c.l.b16 %v1178_v6  ;;  %v1482_v6 = vld [vmem:[%s3142_s9 + $0x48] sm:$0xff] }
 0x45f   :  { %v965_v45 = vpop.permute.xlu1 %964  ;;  %v1043_v56 = vsel %vm599_vm7, %v1028_v28, %v1042_v63  ;;  %v1164_v63 = vld [vmem:[%s3140_s7 + $0x60] sm:$0xff] }
 0x460   :  { %v1138_v59 = vrot.slane %v1137_v55, 4  ;;  %v1036_v42 = vrot.slane %v965_v45, %v2305_v51  ;;  %v1094_v29 = vmul.f32 %v1062_v47, %v965_v45  ;;  %v1135_v31 = vrot.slane %v1134_v53, 1 }
 0x461   :  { %v1129_v51 = vadd.f32 %v1128_v22, %v1127_v23  ;;  %v1177_v47 = vpack.c.bf16 %v1108_v58, %v1108_v58 }
 0x462   :  { %v1139_v34 = vadd.f32 %v1138_v59, %v1137_v55  ;;  %v1144_v37 = vadd.f32 %v1094_v29, %v1093_v21  ;;  %v1037_v38 = vsel %vm524_vm1, %v1036_v42, %v1032_v35  ;;  %v1136_v1 = vadd.f32 %v1135_v31, %v1134_v53  ;;  %v1161_v53 = vld [vmem:[%s3140_s7 + $0x48] sm:$0xff]  ;;  %v1160_v29 = vld [vmem:[%s3140_s7 + $0x40] sm:$0xff]  ;;  %v1162_v31 = vld [vmem:[%s3140_s7 + $0x50] sm:$0xff] }
 0x463   :  { %v1044_v30 = vsel %vm601_vm8, %v1037_v38, %v1043_v56  ;;  %v1180_v35 = vpack.c.bf16 %v1129_v51, %v1129_v51  ;;  %v1289_v43 = vunpack.c.l.b16 %v1177_v47  ;;  %v1168_v59 = vpack.c.bf16 %v1156_v27, %v1152_v26  ;;  %v1478_v38 = vld [vmem:[%s3142_s9 + $0x28] sm:$0xff]  ;;  %v1477_v51 = vld [vmem:[%s3142_s9 + $0x20] sm:$0xff]  ;;  %v1491_v26 = vld [vmem:[%s3142_s9 + $0x90] sm:$0xff] }
 0x464   :  { %v1140_v2 = vrot.slane %v1139_v34, 2  ;;  %v1145_v46 = vrot.slane %v1144_v37, 4  ;;  %1046 = vst.msk [vmem:[#allocation4] sm:$0xff] %vm604_vm9, %v1044_v30  ;;  %v1181_v8 = vpack.c.bf16 %v1136_v1, %v1136_v1  ;;  %v1170_v42 = vpack.c.bf16 %v1158_v19, %v1154_v44  ;;  %v1480_v30 = vld [vmem:[%s3142_s9 + $0x38] sm:$0xff]  ;;  %v1495_v27 = vld [vmem:[%s3142_s9 + $0xb0] sm:$0xff]  ;;  %v1502_v44 = vld [vmem:[%s3142_s9 + $0xe8] sm:$0xff] }
 0x465   :  { %v1292_v16 = vunpack.c.l.b16 %v1180_v35  ;;  %v1296_v33 = vsel %vm589_vm2, %v1289_v43, %v1288_v13  ;;  %v1173_v22 = vpack.c.bf16 %v1165_v7, %v1161_v53  ;;  %v1175_v56 = vpack.c.bf16 %v1167_v32, %v1163_v0  ;;  %v1483_v13 = vld [vmem:[%s3142_s9 + $0x50] sm:$0xff]  ;;  %v1500_v19 = vld [vmem:[%s3142_s9 + $0xd8] sm:$0xff]  ;;  %v1497_v7 = vld [vmem:[%s3142_s9 + $0xc0] sm:$0xff] }
 0x466   :  { %v1141_v61 = vadd.f32 %v1140_v2, %v1139_v34  ;;  %v1146_v3 = vadd.f32 %v1145_v46, %v1144_v37  ;;  %v1293_v57 = vunpack.c.l.b16 %v1181_v8  ;;  %v1297_v20 = vsel %vm591_vm3, %v1290_v54, %v1296_v33  ;;  %v1166_v34 = vld [vmem:[%s3140_s7 + $0x70] sm:$0xff]  ;;  %v1474_v37 = vld [vmem:[%s3142_s9 + $0x8] sm:$0xff]  ;;  %v44_v2 = vld [vmem:[%s3133_s0] sm:$0xff] }
 0x467   :  { %v1298_v24 = vsel %vm593_vm4, %v1291_v12, %v1297_v20  ;;  %v1172_v60 = vpack.c.bf16 %v1164_v63, %v1160_v29  ;;  %v1174_v40 = vpack.c.bf16 %v1166_v34, %v1162_v31  ;;  %v1473_v46 = vld [vmem:[%s3142_s9] sm:$0xff]  ;;  %v1538_v47 = vpack.c.bf16 %v1478_v38, %v1474_v37  ;;  %v1487_v12 = vld [vmem:[%s3142_s9 + $0x70] sm:$0xff]  ;;  %v1496_v33 = vld [vmem:[%s3142_s9 + $0xb8] sm:$0xff] }
 0x468   :  { %v1142_v21 = vrot.slane %v1141_v61, 1  ;;  %v1147_v50 = vrot.slane %v1146_v3, 2  ;;  %v1299_v23 = vsel %vm595_vm5, %v1292_v16, %v1298_v24  ;;  %v1540_v1 = vpack.c.bf16 %v1480_v30, %v1476_v11  ;;  %v1481_v8 = vld [vmem:[%s3142_s9 + $0x40] sm:$0xff]  ;;  %v1492_v16 = vld [vmem:[%s3142_s9 + $0x98] sm:$0xff]  ;;  %v1507_v38 = vld [vmem:[%s3142_s9 + $0x110] sm:$0xff] }
 0x469   :  { %v1300_v55 = vsel %vm597_vm6, %v1293_v57, %v1299_v23  ;;  %v1537_v35 = vpack.c.bf16 %v1477_v51, %v1473_v46  ;;  %v1489_v20 = vld [vmem:[%s3142_s9 + $0x80] sm:$0xff]  ;;  %v1498_v23 = vld [vmem:[%s3142_s9 + $0xc8] sm:$0xff]  ;;  %v1504_v53 = vld [vmem:[%s3142_s9 + $0xf8] sm:$0xff] }
 0x46a   :  { %v1143_v10 = vadd.f32 %v1142_v21, %v1141_v61  ;;  %v1148_v4 = vadd.f32 %v1147_v50, %v1146_v3  ;;  %v1475_v61 = vld [vmem:[%s3142_s9 + $0x10] sm:$0xff]  ;;  %v1488_v21 = vld [vmem:[%s3142_s9 + $0x78] sm:$0xff]  ;;  %v1151_v50 = vpack.c.bf16 %v44_v2, %v44_v2  ;;  %v1501_v0 = vld [vmem:[%s3142_s9 + $0xe0] sm:$0xff]  ;;  %v1550_v32 = vpack.c.bf16 %v1502_v44, %v1498_v23 }
 0x46b   :  { %v1479_v3 = vld [vmem:[%s3142_s9 + $0x30] sm:$0xff]  ;;  %v1544_v54 = vpack.c.bf16 %v1488_v21, %v1484_v49  ;;  %v1508_v29 = vld [vmem:[%s3142_s9 + $0x118] sm:$0xff]  ;;  %v1509_v31 = vld [vmem:[%s3142_s9 + $0x120] sm:$0xff] }
 0x46c   :  { %v1182_v14 = vpack.c.bf16 %v1143_v10, %v1143_v10  ;;  %v1149_v15 = vrot.slane %v1148_v4, 1  ;;  %v1539_v43 = vpack.c.bf16 %v1479_v3, %v1475_v61  ;;  %v1485_v10 = vld [vmem:[%s3142_s9 + $0x60] sm:$0xff]  ;;  %v1512_v63 = vld [vmem:[%s3142_s9 + $0x138] sm:$0xff]  ;;  %v1511_v11 = vld [vmem:[%s3142_s9 + $0x130] sm:$0xff] }
 0x46d   :  { %v1541_v57 = vpack.c.bf16 %v1485_v10, %v1481_v8  ;;  %v1556_v37 = vpack.c.bf16 %v1512_v63, %v1508_v29  ;;  %v1514_v30 = vld [vmem:[%s3142_s9 + $0x148] sm:$0xff]  ;;  %v1520_v2 = vld [vmem:[%s3142_s9 + $0x178] sm:$0xff]  ;;  %v1555_v51 = vpack.c.bf16 %v1511_v11, %v1507_v38  ;;  %v1521_v10 = vld [vmem:[%s3142_s9 + $0x180] sm:$0xff] }
 0x46e   :  { %v1150_v62 = vadd.f32 %v1149_v15, %v1148_v4  ;;  %v1294_v18 = vunpack.c.l.b16 %v1182_v14  ;;  %v1542_v4 = vpack.c.bf16 %v1486_v36, %v1482_v6  ;;  %v1490_v14 = vld [vmem:[%s3142_s9 + $0x88] sm:$0xff]  ;;  %v1515_v6 = vld [vmem:[%s3142_s9 + $0x150] sm:$0xff] }
 0x46f   :  { %v1494_v15 = vld [vmem:[%s3142_s9 + $0xa8] sm:$0xff]  ;;  %v1519_v36 = vld [vmem:[%s3142_s9 + $0x170] sm:$0xff] }
 0x470   :  { %v1183_v25 = vpack.c.bf16 %v1150_v62, %v1150_v62  ;;  %v1301_v39 = vsel %vm599_vm7, %v1294_v18, %v1300_v55  ;;  %v1543_v62 = vpack.c.bf16 %v1487_v12, %v1483_v13  ;;  %v1493_v18 = vld [vmem:[%s3142_s9 + $0xa0] sm:$0xff]  ;;  %v1546_v24 = vpack.c.bf16 %v1494_v15, %v1490_v14  ;;  %v1522_v49 = vld [vmem:[%s3142_s9 + $0x188] sm:$0xff]  ;;  %v1523_v12 = vld [vmem:[%s3142_s9 + $0x190] sm:$0xff] }
 0x471   :  { %v1547_v55 = vpack.c.bf16 %v1495_v27, %v1491_v26  ;;  %v1526_v21 = vld [vmem:[%s3142_s9 + $0x1a8] sm:$0xff]  ;;  %v1559_v8 = vpack.c.bf16 %v1519_v36, %v1515_v6  ;;  %v1527_v14 = vld [vmem:[%s3142_s9 + $0x1b0] sm:$0xff]  ;;  %v1533_v26 = vld [vmem:[%s3142_s9 + $0x1e0] sm:$0xff] }
 0x472   :  { %v1295_v28 = vunpack.c.l.b16 %v1183_v25  ;;  %v1548_v25 = vpack.c.bf16 %v1496_v33, %v1492_v16  ;;  %v1530_v15 = vld [vmem:[%s3142_s9 + $0x1c8] sm:$0xff]  ;;  %v1532_v33 = vld [vmem:[%s3142_s9 + $0x1d8] sm:$0xff]  ;;  %v1531_v27 = vld [vmem:[%s3142_s9 + $0x1d0] sm:$0xff] }
 0x473   :  { %v1534_v16 = vld [vmem:[%s3142_s9 + $0x1e8] sm:$0xff]  ;;  %v1535_v23 = vld [vmem:[%s3142_s9 + $0x1f0] sm:$0xff] }
 0x474   :  { %v1302_v45 = vsel %vm601_vm8, %v1295_v28, %v1301_v39  ;;  %v1545_v28 = vpack.c.bf16 %v1493_v18, %v1489_v20  ;;  %v1552_v39 = vpack.c.bf16 %v1504_v53, %v1500_v19  ;;  %v1563_v20 = vpack.c.bf16 %v1527_v14, %v1523_v12  ;;  %v1529_v18 = vld [vmem:[%s3142_s9 + $0x1c0] sm:$0xff] }
 0x475   :  { %v1303_v58 = vpack.c.b16 %v1302_v45, %v1302_v45  ;;  %v1503_v45 = vld [vmem:[%s3142_s9 + $0xf0] sm:$0xff]  ;;  %v1565_v44 = vpack.c.bf16 %v1533_v26, %v1529_v18  ;;  %v1567_v19 = vpack.c.bf16 %v1535_v23, %v1531_v27 }
 0x477   :  { %1338 = vmatmul.mubr.bf16.vlgmr.msra.gmra.mrb[4].mxu0 %v1303_v58  ;;  %1379 = vmatmul.mubr.bf16.vlgmr.msra.gmra.mrb[16].mxu1 %v1303_v58  ;;  %v1549_v58 = vpack.c.bf16 %v1501_v0, %v1497_v7 }
 0x478   :  { %1392 = vmatpush1.bf16.msra.mxu0 %v1168_v59  ;;  %1433 = vmatpush1.bf16.msra.mxu1 %v1170_v42  ;;  %v1506_v59 = vld [vmem:[%s3142_s9 + $0x108] sm:$0xff] }
 0x479   :  { %1393 = vmatprep.subr.bf16.mxu0 %v1173_v22  ;;  %1434 = vmatprep.subr.bf16.mxu1 %v1175_v56  ;;  %v1510_v42 = vld [vmem:[%s3142_s9 + $0x128] sm:$0xff]  ;;  %v1505_v56 = vld [vmem:[%s3142_s9 + $0x100] sm:$0xff] }
 0x47a   :  { %1423 = vmatprep.mubr.bf16.mxu0 %v2022_v41  ;;  %1464 = vmatprep.mubr.bf16.mxu1 %v2022_v41  ;;  %v1554_v34 = vpack.c.bf16 %v1510_v42, %v1506_v59  ;;  %v1553_v46 = vpack.c.bf16 %v1509_v31, %v1505_v56 }
 0x47c   :  { %1394 = vmatpush1.bf16.msra.mxu0 %v1172_v60  ;;  %1435 = vmatpush1.bf16.msra.mxu1 %v1174_v40  ;;  %v1518_v60 = vld [vmem:[%s3142_s9 + $0x168] sm:$0xff]  ;;  %v1516_v40 = vld [vmem:[%s3142_s9 + $0x158] sm:$0xff] }
 0x47d   :  { %1569 = vmatprep.subr.bf16.mxu0 %v1538_v47  ;;  %1610 = vmatprep.subr.bf16.mxu1 %v1540_v1  ;;  %v1513_v47 = vld [vmem:[%s3142_s9 + $0x140] sm:$0xff]  ;;  %v1558_v61 = vpack.c.bf16 %v1518_v60, %v1514_v30  ;;  %v1560_v3 = vpack.c.bf16 %v1520_v2, %v1516_v40 }
 0x47e   :  { %v1517_v1 = vld [vmem:[%s3142_s9 + $0x160] sm:$0xff] }
 0x47f   :  { %1775 = vmatmul.mubr.msk.bf16.vlgmr.msra.gmra.mrb[8].mxu0 %vm1387_vm10, %v1151_v50  ;;  %1776 = vmatmul.mubr.msk.bf16.vlgmr.msra.gmra.mrb[20].mxu1 %vm1387_vm10, %v1151_v50  ;;  %v1524_v50 = vld [vmem:[%s3142_s9 + $0x198] sm:$0xff] }
 0x480   :  { %1570 = vmatpush1.bf16.msra.mxu0 %v1537_v35  ;;  %1611 = vmatpush1.bf16.msra.mxu1 %v1539_v43  ;;  %v1528_v35 = vld [vmem:[%s3142_s9 + $0x1b8] sm:$0xff]  ;;  %v1557_v43 = vpack.c.bf16 %v1517_v1, %v1513_v47 }
 0x481   :  { %1571 = vmatprep.subr.bf16.mxu0 %v1542_v4  ;;  %1612 = vmatprep.subr.bf16.mxu1 %v1544_v54  ;;  %v1525_v4 = vld [vmem:[%s3142_s9 + $0x1a0] sm:$0xff]  ;;  %v1562_v54 = vpack.c.bf16 %v1526_v21, %v1522_v49  ;;  %v1564_v13 = vpack.c.bf16 %v1528_v35, %v1524_v50 }
 0x482   :  { %1601 = vmatprep.mubr.bf16.mxu0 %v2022_v41  ;;  %1642 = vmatprep.mubr.bf16.mxu1 %v2022_v41  ;;  %v1499_v41 = vld [vmem:[%s3142_s9 + $0xd0] sm:$0xff] }
 0x483   :  { %v1551_v22 = vpack.c.bf16 %v1503_v45, %v1499_v41 }
 0x484   :  { %1572 = vmatpush1.bf16.msra.mxu0 %v1541_v57  ;;  %1613 = vmatpush1.bf16.msra.mxu1 %v1543_v62  ;;  %v1536_v57 = vld [vmem:[%s3142_s9 + $0x1f8] sm:$0xff]  ;;  %v1561_v62 = vpack.c.bf16 %v1525_v4, %v1521_v10 }
 0x485   :  { %1573 = vmatprep.subr.bf16.mxu0 %v1546_v24  ;;  %1614 = vmatprep.subr.bf16.mxu1 %v1548_v25  ;;  %v1566_v24 = vpack.c.bf16 %v1534_v16, %v1530_v15  ;;  %v1568_v25 = vpack.c.bf16 %v1536_v57, %v1532_v33 }
 0x488   :  { %1574 = vmatpush1.bf16.msra.mxu0 %v1545_v28  ;;  %1615 = vmatpush1.bf16.msra.mxu1 %v1547_v55 }
 0x489   :  { %1575 = vmatprep.subr.bf16.mxu0 %v1550_v32  ;;  %1616 = vmatprep.subr.bf16.mxu1 %v1552_v39 }
 0x48c   :  { %1576 = vmatpush1.bf16.msra.mxu0 %v1549_v58  ;;  %1617 = vmatpush1.bf16.msra.mxu1 %v1551_v22 }
 0x48d   :  { %1577 = vmatprep.subr.bf16.mxu0 %v1554_v34  ;;  %1618 = vmatprep.subr.bf16.mxu1 %v1556_v37 }
 0x490   :  { %1578 = vmatpush1.bf16.msra.mxu0 %v1553_v46  ;;  %1619 = vmatpush1.bf16.msra.mxu1 %v1555_v51 }
 0x491   :  { %1579 = vmatprep.subr.bf16.mxu0 %v1558_v61  ;;  %1620 = vmatprep.subr.bf16.mxu1 %v1560_v3 }
 0x494   :  { %1580 = vmatpush1.bf16.msra.mxu0 %v1557_v43  ;;  %1621 = vmatpush1.bf16.msra.mxu1 %v1559_v8 }
 0x495   :  { %1581 = vmatprep.subr.bf16.mxu0 %v1562_v54  ;;  %1622 = vmatprep.subr.bf16.mxu1 %v1564_v13 }
 0x498   :  { %1582 = vmatpush1.bf16.msra.mxu0 %v1561_v62  ;;  %1623 = vmatpush1.bf16.msra.mxu1 %v1563_v20 }
 0x499   :  { %1583 = vmatprep.subr.bf16.mxu0 %v1566_v24  ;;  %1624 = vmatprep.subr.bf16.mxu1 %v1568_v25 }
 0x49c   :  { %1584 = vmatpush1.bf16.msra.mxu0 %v1565_v44  ;;  %1625 = vmatpush1.bf16.msra.mxu1 %v1567_v19 }
 0x49f   :  { %1602 = vmatmul.mubr.bf16.vlgmr.msra.gmra.mrb[12].mxu0 %v2209_v52  ;;  %1643 = vmatmul.mubr.bf16.vlgmr.msra.gmra.mrb[24].mxu1 %v2209_v52 }
 0x4a0   :  { %1982 = shalt.err (!%p1979_p4)
}
 0x4a1   :  { %s1983_s5 = scalar_lea.hbm %s3146_s13, 128 }
 0x4a2   :  { %p1984_p5 = scmp.ne.s32.totalorder %s3146_s13, %s1983_s5  ;;  %p1987_p6 = scmp.lt.u32.totalorder %s1983_s5, %s3146_s13 }
 0x4a4   :  { %p1989_p7 = pnand %p1987_p6, %p1984_p5 }
 0x4a6   :  { %1992 = shalt.err (!%p1989_p7)
}
 0x4a7   :  { %1754 = dma.vmem_to_hbm [thread:$0]  %s1752_s19, 128, %s3146_s13, [#allocation5]   ;;  %v1655_v38 = vld [vmem:[%s3141_s8] sm:$0xf] }
 0x4a8   :  { %v1681_v11 = vld [vmem:[%s3143_s10] sm:$0xf]  ;;  %v1660_v30 = vrot.slane %v1655_v38, %v2235_v5  ;;  %v1664_v2 = vrot.slane %v1655_v38, %v2379_v17  ;;  %v1672_v10 = vrot.slane %v1655_v38, %v2405_v9  ;;  %v1668_v15 = vrot.slane %v1655_v38, %v2387_v48  ;;  %s2024_s27 = smov [#allocation2]  }
 0x4a9   :  { %v1686_v51 = vrot.slane %v1681_v11, %v2235_v5  ;;  %v1690_v6 = vrot.slane %v1681_v11, %v2379_v17  ;;  %v1698_v14 = vrot.slane %v1681_v11, %v2405_v9  ;;  %v1694_v33 = vrot.slane %v1681_v11, %v2387_v48  ;;  %v46_v27 = vld [vmem:[%s3135_s2] sm:$0xff]  ;;  %s1741_s1 = sshll.u32 %s2024_s27, 4  ;;  %s1742_s1 = int_to_ptr.vmem [resolvable:$true] %s1741_s1 }
 0x4aa   :  { %s1993_s28 = scalar_lea.vmem %s1742_s1, 128  ;;  %p1998_p9 = scmp.lt.s32.totalorder %s1742_s1, %s1742_s1 }
 0x4ab   :  { %p1994_p8 = scmp.ne.s32.totalorder %s1742_s1, %s1993_s28  ;;  %p1999_p10 = scmp.lt.s32.totalorder %s1993_s28, %s1993_s28 }
 0x4ad   :  { %p2000_p11 = por %p1999_p10, %p1998_p9 }
 0x4af   :  { %p2001_p12 = pnand %p2000_p11, %p1994_p8 }
 0x54a   :  { %v1339_v52 = vpop.f32.mrb[4].mxu0  ;;  %v1380_v53 = vpop.f32.mrb[16].mxu1 }
 0x54b   :  { %v1341_v28 = vpop.f32.mrb[5].mxu0  ;;  %v1382_v55 = vpop.f32.mrb[17].mxu1 }
 0x54c   :  { %v1343_v7 = vpop.f32.mrb[6].mxu0  ;;  %v1384_v0 = vpop.f32.mrb[18].mxu1 }
 0x54d   :  { %v1344_v32 = vpop.f32.mrb[7].mxu0  ;;  %v1385_v39 = vpop.f32.mrb[19].mxu1 }
 0x552   :  { %v1425_v41 = vpop.f32.mrb[8].mxu0  ;;  %v1466_v45 = vpop.f32.mrb[20].mxu1 }
 0x553   :  { %v1426_v59 = vadd.f32 %v1425_v41, %v1339_v52  ;;  %v1467_v42 = vadd.f32 %v1466_v45, %v1380_v53  ;;  %v1427_v29 = vpop.f32.mrb[9].mxu0  ;;  %v1468_v63 = vpop.f32.mrb[21].mxu1 }
 0x554   :  { %v1428_v58 = vadd.f32 %v1427_v29, %v1341_v28  ;;  %v1469_v22 = vadd.f32 %v1468_v63, %v1382_v55  ;;  %v1429_v56 = vpop.f32.mrb[10].mxu0  ;;  %v1470_v31 = vpop.f32.mrb[22].mxu1 }
 0x555   :  { %v1430_v34 = vpop.f32.mrb[11].mxu0  ;;  %v1471_v37 = vpop.f32.mrb[23].mxu1 }
 0x572   :  { %v1603_v60 = vpop.f32.mrb[12].mxu0  ;;  %v1644_v40 = vpop.f32.mrb[24].mxu1 }
 0x573   :  { %v1651_v46 = vadd.f32 %v1603_v60, %v1426_v59  ;;  %v1653_v47 = vadd.f32 %v1644_v40, %v1467_v42  ;;  %v1605_v1 = vpop.f32.mrb[13].mxu0  ;;  %v1646_v61 = vpop.f32.mrb[25].mxu1 }
 0x574   :  { %v1652_v3 = vadd.f32 %v1605_v1, %v1428_v58  ;;  %v1654_v36 = vadd.f32 %v1646_v61, %v1469_v22  ;;  %v1607_v49 = vpop.f32.mrb[14].mxu0  ;;  %v1648_v21 = vpop.f32.mrb[26].mxu1 }
 0x575   :  { %v1677_v50 = vadd.f32 %v1660_v30, %v1651_v46  ;;  %v1608_v35 = vpop.f32.mrb[15].mxu0  ;;  %v1649_v43 = vpop.f32.mrb[27].mxu1  ;;  %v1679_v16 = vadd.f32 %v1668_v15, %v1653_v47 }
 0x576   :  { %v1678_v8 = vadd.f32 %v1664_v2, %v1652_v3  ;;  %v1680_v5 = vadd.f32 %v1672_v10, %v1654_v36 }
 0x577   :  { %v1703_v4 = vadd.f32 %v1686_v51, %v1677_v50  ;;  %v1705_v62 = vadd.f32 %v1694_v33, %v1679_v16 }
 0x578   :  { %v1704_v54 = vadd.f32 %v1690_v6, %v1678_v8  ;;  %v1706_v17 = vadd.f32 %v1698_v14, %v1680_v5 }
 0x579   :  { %v1777_v13 = vmul.f32 -1.442695, %v1703_v4 }
 0x57a   :  { %v1778_v12 = vmul.f32 -1.442695, %v1704_v54  ;;  %v1779_v57 = vmul.f32 -1.442695, %v1706_v17 }
 0x57b   :  { %1947 = vpow2.f32 %v1777_v13 }
 0x57c   :  { %1949 = vpow2.f32 %v1778_v12 }
 0x57d   :  { %1951 = vpow2.f32 %v1779_v57 }
 0x57e   :  { %1953 = vtanh.f32 %v1705_v62 }
 0x585   :  { %v1948_v20 = vpop.eup %1947 }
 0x586   :  { %v1950_v18 = vpop.eup %1949  ;;  %v1710_v24 = vadd.f32 1.0, %v1948_v20 }
 0x587   :  { %v1716_v25 = vadd.f32 1.0, %v1950_v18  ;;  %v1952_v26 = vpop.eup %1951 }
 0x588   :  { %1955 = vrcp.f32 %v1710_v24  ;;  %v1954_v9 = vpop.eup %1953  ;;  %v1723_v19 = vadd.f32 1.0, %v1952_v26 }
 0x589   :  { %1957 = vrcp.f32 %v1716_v25 }
 0x58a   :  { %1959 = vrcp.f32 %v1723_v19 }
 0x592   :  { %v1956_v23 = vpop.eup %1955 }
 0x593   :  { %v1958_v44 = vpop.eup %1957  ;;  %v1727_v48 = vmul.f32 %v1956_v23, %v1954_v9 }
 0x594   :  { %v1726_v52 = vmul.f32 %v1958_v44, %v46_v27 }
 0x596   :  { %v1728_v53 = vadd.f32 %v1727_v48, %v1726_v52 }
 0x598   :  { %1961 = vtanh.f32 %v1728_v53  ;;  %1731 = vst [vmem:[#allocation2] sm:$0xff] %v1728_v53 }
 0x599   :  { %2004 = shalt.err (!%p2001_p12)
}
 0x59a   :  { %s2005_s30 = scalar_lea.hbm %s3145_s12, 128 }
 0x59b   :  { %p2006_p13 = scmp.ne.s32.totalorder %s3145_s12, %s2005_s30  ;;  %p2009_p0 = scmp.lt.u32.totalorder %s2005_s30, %s3145_s12 }
 0x59d   :  { %p2011_p1 = pnand %p2009_p0, %p2006_p13 }
 0x59f   :  { %2014 = shalt.err (!%p2011_p1)
}
 0x5a0   :  { %1744 = dma.vmem_to_hbm [thread:$0]  %s1742_s1, 128, %s3145_s12, [#allocation3]   ;;  %v1960_v28 = vpop.eup %1959 }
 0x5a2   :  { %v1962_v55 = vpop.eup %1961 }
 0x5a3   :  { %v1730_v7 = vmul.f32 %v1962_v55, %v1960_v28 }
 0x5a5   :  { %1732 = vst [vmem:[%s3144_s11] sm:$0xff] %v1730_v7 }
 0x5a6   :  { %2015 = dma.done.wait [#allocation3], 128  }
 0x5a7   :  { %2016 = vsyncadd [#allocation3], 4294967168 }
 0x5a8   :  { %2017 = dma.done.wait [#allocation5], 128  }
 0x5a9   :  { %2018 = vsyncadd [#allocation5], 4294967168 }
 0x5aa   :  { %1763 = vsyncpa [#allocation3], 1 }
 0x5ab   :  { %1764 = vsyncpa [#allocation5], 1 }

</bundles_post_ra>
